<compile_context>
chip_gen: v7x
topology: tpu7x:2x2x1
jax: 0.10.0
libtpu: 0.0.40
codegen_flags: <defaults>
</compile_context>

<pallas_src>
import math
import functools

import jax
import jax.numpy as jnp
from jax.experimental import pallas as pl
from jax.experimental.pallas import tpu as pltpu

GAIN = math.sqrt(2.0)
VMEM_LIMIT = 32 * 1024 * 1024


# ----------------------------- Pallas kernels --------------------------------

def _stage_kernel(cols_ref, w_ref, b_ref, swm_ref, sws_ref, sb_ref,
                  y_ref, st_ref, *, inv_n):
    """One conv stage of an EncodeBlock, fully fused, per batch sample.

    cols_ref : (K, M)        bf16  im2col patches (M = Ho*Wo on lanes)
    w_ref    : (Cout, K)     bf16  effective (equalized-lr) conv weight
    b_ref    : (Cout, 1)     f32   conv bias
    swm_ref  : (latent,Cout) f32   style-linear weight, mean half
    sws_ref  : (latent,Cout) f32   style-linear weight, std half
    sb_ref   : (latent, 1)   f32   style-linear bias
    y_ref    : (Cout, M)           InstanceNorm'ed activation (bf16 store)
    st_ref   : (latent, 1)   f32   style-linear output for this stage
    """
    acc = jnp.dot(w_ref[...], cols_ref[...], preferred_element_type=jnp.float32)
    a = acc + b_ref[...]                         # bias
    a = jnp.maximum(a, 0.2 * a)                  # LeakyReLU(0.2)
    # Independent sum / sum-of-squares reductions (back-to-back in the XLU slot).
    s = jnp.sum(a, axis=1, keepdims=True)
    sq = jnp.sum(a * a, axis=1, keepdims=True)
    mu = s * inv_n
    var = jnp.maximum(sq * inv_n - mu * mu, 0.0)    # guard f32 cancellation
    sd = jnp.sqrt(var)                              # style std: biased, no eps (ref)
    inv_std = jax.lax.rsqrt(var + 1e-5)             # InstanceNorm2d eps
    y_ref[...] = ((a - mu) * inv_std).astype(y_ref.dtype)
    st_ref[...] = (jnp.dot(swm_ref[...], mu, preferred_element_type=jnp.float32)
                   + jnp.dot(sws_ref[...], sd, preferred_element_type=jnp.float32)
                   + sb_ref[...])


def _stage_kernel_batched(cols_ref, w_ref, b_ref, red_ref, bcast_ref,
                          swm_ref, sws_ref, sb_ref, y_ref, st_ref, *, inv_n):
    """Same stage, whole batch folded onto the lane axis (for small M < 128).

    cols_ref : (K, B*M)   bf16   red_ref : (B*M, B)  per-sample sum matrix
    bcast_ref: (B, B*M)          (block-diagonal ones; MXU does the segmented
                                  reductions / broadcasts)
    y_ref    : (Cout, B*M)       st_ref : (latent, B)
    """
    acc = jnp.dot(w_ref[...], cols_ref[...], preferred_element_type=jnp.float32)
    a = acc + b_ref[...]
    a = jnp.maximum(a, 0.2 * a)
    s = jnp.dot(a, red_ref[...], preferred_element_type=jnp.float32)       # (Cout,B)
    sq = jnp.dot(a * a, red_ref[...], preferred_element_type=jnp.float32)  # (Cout,B)
    mu = s * inv_n
    var = jnp.maximum(sq * inv_n - mu * mu, 0.0)
    sd = jnp.sqrt(var)
    inv_std = jax.lax.rsqrt(var + 1e-5)
    mu_f = jnp.dot(mu, bcast_ref[...], preferred_element_type=jnp.float32)      # (Cout,B*M)
    is_f = jnp.dot(inv_std, bcast_ref[...], preferred_element_type=jnp.float32)
    y_ref[...] = ((a - mu_f) * is_f).astype(y_ref.dtype)
    st_ref[...] = (jnp.dot(swm_ref[...], mu, preferred_element_type=jnp.float32)
                   + jnp.dot(sws_ref[...], sd, preferred_element_type=jnp.float32)
                   + sb_ref[...])


def conv_in_style_fused(cols, w, bias, swm, sws, sb, n_spatial, out_dtype):
    """Per-sample grid path (M >= 128 lanes).  cols: (B, K, M)."""
    B, K, M = cols.shape
    Cout = w.shape[0]
    latent = swm.shape[0]
    kern = functools.partial(_stage_kernel, inv_n=1.0 / float(n_spatial))
    y, st = pl.pallas_call(
        kern,
        out_shape=(jax.ShapeDtypeStruct((B, Cout, M), out_dtype),
                   jax.ShapeDtypeStruct((B, latent, 1), jnp.float32)),
        grid=(B,),
        in_specs=[pl.BlockSpec((None, K, M), lambda b: (b, 0, 0)),
                  pl.BlockSpec((Cout, K), lambda b: (0, 0)),
                  pl.BlockSpec((Cout, 1), lambda b: (0, 0)),
                  pl.BlockSpec((latent, Cout), lambda b: (0, 0)),
                  pl.BlockSpec((latent, Cout), lambda b: (0, 0)),
                  pl.BlockSpec((latent, 1), lambda b: (0, 0))],
        out_specs=(pl.BlockSpec((None, Cout, M), lambda b: (b, 0, 0)),
                   pl.BlockSpec((None, latent, 1), lambda b: (b, 0, 0))),
        compiler_params=pltpu.CompilerParams(
            dimension_semantics=("parallel",),
            vmem_limit_bytes=VMEM_LIMIT),
    )(cols, w, bias, swm, sws, sb)
    return y, st[:, :, 0]                       # (B,Cout,M), (B,latent)


def conv_in_style_fused_batched(cols, w, bias, red, bcast, swm, sws, sb,
                                n_spatial, batch, out_dtype):
    """Single-step path (M < 128): whole batch lane-dense.  cols: (K, B*M)."""
    K, BM = cols.shape
    Cout = w.shape[0]
    latent = swm.shape[0]
    kern = functools.partial(_stage_kernel_batched, inv_n=1.0 / float(n_spatial))
    y, st = pl.pallas_call(
        kern,
        out_shape=(jax.ShapeDtypeStruct((Cout, BM), out_dtype),
                   jax.ShapeDtypeStruct((latent, batch), jnp.float32)),
        compiler_params=pltpu.CompilerParams(vmem_limit_bytes=VMEM_LIMIT),
    )(cols, w, bias, red, bcast, swm, sws, sb)
    return y, st                                 # (Cout,B*M), (latent,B)


# ------------------------------- JAX glue -------------------------------------

def _im2col_taps(x, ksize, stride, pad):
    """NCHW -> (B, T, C, Ho, Wo) stacked taps (T = ksize*ksize)."""
    B, C, H, W = x.shape
    xp = jnp.pad(x, ((0, 0), (0, 0), (pad, pad), (pad, pad)))
    Ho = (H + 2 * pad - ksize) // stride + 1
    Wo = (W + 2 * pad - ksize) // stride + 1
    taps = [xp[:, :, kh:kh + stride * Ho:stride, kw:kw + stride * Wo:stride]
            for kh in range(ksize) for kw in range(ksize)]
    return jnp.stack(taps, axis=1), Ho, Wo


def im2col_per_sample(x, ksize, stride, pad):
    t, Ho, Wo = _im2col_taps(x, ksize, stride, pad)            # (B,T,C,Ho,Wo)
    B = x.shape[0]
    return t.reshape(B, -1, Ho * Wo), Ho, Wo                   # (B, T*C, M)


def im2col_batched_lanes(x, ksize, stride, pad):
    t, Ho, Wo = _im2col_taps(x, ksize, stride, pad)            # (B,T,C,Ho,Wo)
    B = x.shape[0]
    t = jnp.transpose(t, (1, 2, 0, 3, 4))                      # (T,C,B,Ho,Wo)
    return t.reshape(-1, B * Ho * Wo), Ho, Wo                  # (T*C, B*M)


def conv_w_to_mat(w):
    """(Cout, Cin, KH, KW) -> (Cout, KH*KW*Cin), matching the im2col tap order."""
    return jnp.transpose(w, (0, 2, 3, 1)).reshape(w.shape[0], -1)


def blur_3x3_to_4x4(w3):
    """StyleGAN/ALAE fused-downscale blur: 3x3 kernel -> 4x4 (x0.25)."""
    wp = jnp.pad(w3, ((0, 0), (0, 0), (1, 1), (1, 1)))
    return (wp[:, :, 1:, 1:] + wp[:, :, :-1, 1:]
            + wp[:, :, 1:, :-1] + wp[:, :, :-1, :-1]) * 0.25


def style_eff(sw, sb):
    """LREQLinear(2C -> latent), split into mean/std halves for the kernel."""
    two_c = sw.shape[1]
    sw_eff = sw * (GAIN / math.sqrt(two_c))
    c = two_c // 2
    return sw_eff[:, :c], sw_eff[:, c:], sb.reshape(-1, 1)


def conv_stage(x, w_mat, bias, swm, sws, sb, *, ksize, stride, pad, out_dtype):
    """Fused conv + bias + LReLU + stats + InstanceNorm + style-linear stage."""
    B, Cin, H, W = x.shape
    Cout = w_mat.shape[0]
    Ho = (H + 2 * pad - ksize) // stride + 1
    Wo = (W + 2 * pad - ksize) // stride + 1
    M = Ho * Wo
    xb = x.astype(jnp.bfloat16)
    wb = w_mat.astype(jnp.bfloat16)
    if M >= 128:
        cols, Ho, Wo = im2col_per_sample(xb, ksize, stride, pad)
        y, st = conv_in_style_fused(cols, wb, bias, swm, sws, sb, M, out_dtype)
        return y.reshape(B, Cout, Ho, Wo), st
    # Small spatial extent: fold batch onto the lane axis, single grid step.
    cols, Ho, Wo = im2col_batched_lanes(xb, ksize, stride, pad)
    red = jnp.repeat(jnp.eye(B, dtype=jnp.float32), M, axis=0)        # (B*M, B)
    y, st = conv_in_style_fused_batched(cols, wb, bias, red, red.T,
                                        swm, sws, sb, M, B, out_dtype)
    y = y.reshape(Cout, B, Ho, Wo).transpose(1, 0, 2, 3)
    return y, st.T


# ------------------------------ EncodeBlock ------------------------------------

def encode_block_forward(x, blk, is_last=False):
    """x: (B,Cin,H,W) NCHW -> (x_out: (B,Cout,H/2,W/2), w_style: (B, 2*latent))."""
    Cin = x.shape[1]
    std = GAIN / math.sqrt(Cin * 9)              # equalized-lr, fan_in = Cin*3*3
    sw1m, sw1s, sb1 = style_eff(*blk['style_1'])
    sw2m, sw2s, sb2 = style_eff(*blk['style_2'])

    # conv_1 (3x3 s1 p1) stage: one fused kernel.
    x1, st1 = conv_stage(x, conv_w_to_mat(blk['w1'] * std), blk['bias_1'],
                         sw1m, sw1s, sb1, ksize=3, stride=1, pad=1,
                         out_dtype=jnp.bfloat16)

    # conv_2: both fused_scale branches reduce to one blurred 4x4 stride-2 conv
    #   fused_scale=True : transform_kernel blur -> 4x4, stride 2, pad 1
    #   fused_scale=False: conv3x3 s1 p1 + avg_pool2d(2) == same blurred 4x4 s2 p1
    w2 = blur_3x3_to_4x4(blk['w2'] * std)
    x2, st2 = conv_stage(x1, conv_w_to_mat(w2), blk['bias_2'],
                         sw2m, sw2s, sb2, ksize=4, stride=2, pad=1,
                         out_dtype=jnp.float32 if is_last else jnp.bfloat16)

    return x2, jnp.concatenate([st1, st2], axis=1)


# -------------------------------- Encoder --------------------------------------

def init_params(key, num_channels=3, ngf=8, maxf=16, latent_size=16,
                num_layers=3, mapping_layers=3, mapping_fmaps=16):
    keys = iter(jax.random.split(key, 64))
    nrm = lambda shape: jax.random.normal(next(keys), shape, jnp.float32)

    params = {'from_rgb': (nrm((ngf, num_channels, 1, 1)),
                           jnp.zeros((ngf,), jnp.float32))}
    blocks = []
    input_nc, mul = ngf, 2
    for _ in range(num_layers):
        output_nc = min(ngf * mul, maxf)
        # fused_scale = (input_nc >= maxf); not needed at runtime - both branches
        # lower to the identical blurred 4x4 stride-2 conv (see encode_block_forward).
        blocks.append(dict(
            w1=nrm((input_nc, input_nc, 3, 3)),
            bias_1=jnp.zeros((input_nc, 1), jnp.float32),
            w2=nrm((output_nc, input_nc, 3, 3)),
            bias_2=jnp.zeros((output_nc, 1), jnp.float32),
            style_1=(nrm((latent_size, 2 * input_nc)),
                     jnp.zeros((latent_size,), jnp.float32)),
            style_2=(nrm((latent_size, 2 * output_nc)),
                     jnp.zeros((latent_size,), jnp.float32)),
        ))
        input_nc = output_nc
        mul *= 2
    params['blocks'] = blocks
    params['dense'] = (nrm((latent_size, input_nc * 4 * 4)),
                       jnp.zeros((latent_size,), jnp.float32))
    maps, in_nc = [], latent_size
    for i in range(mapping_layers):
        out_nc = 1 if i + 1 == mapping_layers else mapping_fmaps
        # lrmul=0.1: raw weight init with std 1/lrmul (ALAE convention)
        maps.append((nrm((out_nc, in_nc)) / 0.1, jnp.zeros((out_nc,), jnp.float32)))
        in_nc = out_nc
    params['map'] = maps
    return params


def encoder_forward(x_nchw, params):
    B, Crgb, H, W = x_nchw.shape
    # from_rgb: LREQ 1x1 conv + bias + LeakyReLU - per-pixel linear, plain JAX.
    wrgb, brgb = params['from_rgb']
    weff = wrgb[:, :, 0, 0] * (GAIN / math.sqrt(Crgb))             # (ngf, Crgb)
    x = jnp.einsum('bchw,oc->bohw', x_nchw, weff) + brgb[None, :, None, None]
    x = jnp.maximum(x, 0.2 * x)

    styles = jnp.zeros((B, 0), jnp.float32)
    n_blocks = len(params['blocks'])
    for bi, blk in enumerate(params['blocks']):
        x, w = encode_block_forward(x, blk, is_last=(bi == n_blocks - 1))
        styles = jnp.concatenate([w, styles], axis=1)              # newest first

    x0 = x.astype(jnp.float32)                                     # (B, C, 4, 4)
    wd, bd = params['dense']
    logit = x0.reshape(B, -1) @ (wd * (GAIN / math.sqrt(wd.shape[1]))).T + bd
    for wm, bm in params['map']:                                   # LREQLinear lrmul=0.1
        lrmul = 0.1
        logit = logit @ (wm * (GAIN / math.sqrt(wm.shape[1])) * lrmul).T + bm * lrmul
    return x0, styles, logit


# ---------------------------------- main ----------------------------------------

if __name__ == "__main__":
    key = jax.random.PRNGKey(0)
    kx, kp = jax.random.split(key)

    # Small config consistent with the module: 3 blocks halve 32x32 -> 4x4,
    # ngf=8, maxf=16 (covers both fused_scale branches), latent_size=16.
    params = init_params(kp, num_channels=3, ngf=8, maxf=16,
                         latent_size=16, num_layers=3,
                         mapping_layers=3, mapping_fmaps=16)
    x = jax.random.normal(kx, (2, 3, 32, 32), jnp.float32)

    fwd = jax.jit(lambda xin: encoder_forward(xin, params))
    x0, styles, logit = fwd(x)
    jax.block_until_ready((x0, styles, logit))

    assert x0.shape == (2, 16, 4, 4)
    assert styles.shape == (2, 16 * 3 * 2)        # latent_size * num_layers * 2
    assert logit.shape == (2, 1)
    assert bool(jnp.all(jnp.isfinite(x0)))
    assert bool(jnp.all(jnp.isfinite(styles)))
    assert bool(jnp.all(jnp.isfinite(logit)))
    print("KERNEL_OK")
</pallas_src>

<mosaic_0001>
module attributes {stable_mosaic.version = 11 : i64} {
  func.func @_stage_kernel(%arg0: i32, %arg1: memref<1x72x1024xbf16, #tpu.memory_space<vmem>>, %arg2: memref<8x72xbf16, #tpu.memory_space<vmem>>, %arg3: memref<8x1xf32, #tpu.memory_space<vmem>>, %arg4: memref<16x8xf32, #tpu.memory_space<vmem>>, %arg5: memref<16x8xf32, #tpu.memory_space<vmem>>, %arg6: memref<16x1xf32, #tpu.memory_space<vmem>>, %arg7: memref<1x8x1024xbf16, #tpu.memory_space<vmem>>, %arg8: memref<1x16x1xf32, #tpu.memory_space<vmem>>) attributes {dimension_semantics = [#tpu.dimension_semantics<parallel>], iteration_bounds = array<i64: 2>, scalar_prefetch = 0 : i64, scratch_operands = 0 : i64, tpu.core_type = #tpu.core_type<tc>, window_params = [{transform_indices = @transform_0, window_bounds = array<i64: 1, 72, 1024>}, {pipeline_mode = #tpu.pipeline_mode<synchronous>, transform_indices = @transform_1, window_bounds = array<i64: 8, 72>}, {pipeline_mode = #tpu.pipeline_mode<synchronous>, transform_indices = @transform_2, window_bounds = array<i64: 8, 1>}, {pipeline_mode = #tpu.pipeline_mode<synchronous>, transform_indices = @transform_3, window_bounds = array<i64: 16, 8>}, {pipeline_mode = #tpu.pipeline_mode<synchronous>, transform_indices = @transform_4, window_bounds = array<i64: 16, 8>}, {pipeline_mode = #tpu.pipeline_mode<synchronous>, transform_indices = @transform_5, window_bounds = array<i64: 16, 1>}, {transform_indices = @transform_6, window_bounds = array<i64: 1, 8, 1024>}, {transform_indices = @transform_7, window_bounds = array<i64: 1, 16, 1>}]} {
    %c0 = arith.constant 0 : index
    %c0_0 = arith.constant 0 : index
    %0 = vector.load %arg2[%c0, %c0_0] : memref<8x72xbf16, #tpu.memory_space<vmem>>, vector<8x72xbf16>
    %c0_1 = arith.constant 0 : index
    %c0_2 = arith.constant 0 : index
    %c0_3 = arith.constant 0 : index
    %1 = vector.load %arg1[%c0_1, %c0_2, %c0_3] : memref<1x72x1024xbf16, #tpu.memory_space<vmem>>, vector<1x72x1024xbf16>
    %2 = vector.shape_cast %1 : vector<1x72x1024xbf16> to vector<72x1024xbf16>
    %cst = arith.constant dense<0.000000e+00> : vector<8x1024xf32>
    %3 = tpu.matmul %0, %2, %cst {dimension_numbers = #tpu.dot_dimension_numbers<[1], [0], [0], [1], [0, 0, 1, 1], [], []>} : vector<8x72xbf16>, vector<72x1024xbf16>, vector<8x1024xf32> -> vector<8x1024xf32>
    %c0_4 = arith.constant 0 : index
    %c0_5 = arith.constant 0 : index
    %4 = vector.load %arg3[%c0_4, %c0_5] : memref<8x1xf32, #tpu.memory_space<vmem>>, vector<8x1xf32>
    %5 = vector.broadcast %4 : vector<8x1xf32> to vector<8x1024xf32>
    %6 = arith.addf %3, %5 : vector<8x1024xf32>
    %cst_6 = arith.constant 2.000000e-01 : f32
    %7 = vector.broadcast %cst_6 : f32 to vector<8x1024xf32>
    %8 = arith.mulf %7, %6 : vector<8x1024xf32>
    %9 = arith.maximumf %6, %8 : vector<8x1024xf32>
    %cst_7 = arith.constant dense<0.000000e+00> : vector<8xf32>
    %10 = vector.multi_reduction <add>, %9, %cst_7 [1] : vector<8x1024xf32> to vector<8xf32>
    %11 = vector.shape_cast %10 : vector<8xf32> to vector<8x1xf32>
    %12 = arith.mulf %9, %9 : vector<8x1024xf32>
    %cst_8 = arith.constant dense<0.000000e+00> : vector<8xf32>
    %13 = vector.multi_reduction <add>, %12, %cst_8 [1] : vector<8x1024xf32> to vector<8xf32>
    %14 = vector.shape_cast %13 : vector<8xf32> to vector<8x1xf32>
    %cst_9 = arith.constant 9.765625E-4 : f32
    %15 = vector.broadcast %cst_9 : f32 to vector<8x1xf32>
    %16 = arith.mulf %11, %15 : vector<8x1xf32>
    %cst_10 = arith.constant 9.765625E-4 : f32
    %17 = vector.broadcast %cst_10 : f32 to vector<8x1xf32>
    %18 = arith.mulf %14, %17 : vector<8x1xf32>
    %19 = arith.mulf %16, %16 : vector<8x1xf32>
    %20 = arith.subf %18, %19 : vector<8x1xf32>
    %cst_11 = arith.constant 0.000000e+00 : f32
    %21 = vector.broadcast %cst_11 : f32 to vector<8x1xf32>
    %22 = arith.maximumf %20, %21 : vector<8x1xf32>
    %23 = math.sqrt %22 : vector<8x1xf32>
    %cst_12 = arith.constant 9.99999974E-6 : f32
    %24 = vector.broadcast %cst_12 : f32 to vector<8x1xf32>
    %25 = arith.addf %22, %24 : vector<8x1xf32>
    %26 = math.rsqrt %25 : vector<8x1xf32>
    %27 = vector.broadcast %16 : vector<8x1xf32> to vector<8x1024xf32>
    %28 = arith.subf %9, %27 : vector<8x1024xf32>
    %29 = vector.broadcast %26 : vector<8x1xf32> to vector<8x1024xf32>
    %30 = arith.mulf %28, %29 : vector<8x1024xf32>
    %31 = arith.truncf %30 : vector<8x1024xf32> to vector<8x1024xbf16>
    %c0_13 = arith.constant 0 : index
    %c0_14 = arith.constant 0 : index
    %c0_15 = arith.constant 0 : index
    %32 = vector.load %arg7[%c0_13, %c0_14, %c0_15] : memref<1x8x1024xbf16, #tpu.memory_space<vmem>>, vector<1x8x1024xbf16>
    %33 = vector.shape_cast %32 : vector<1x8x1024xbf16> to vector<8x1024xbf16>
    %34 = vector.shape_cast %31 : vector<8x1024xbf16> to vector<1x8x1024xbf16>
    tpu.vector_store %arg7[%c0_13, %c0_14, %c0_15], %34 {strides = array<i32>} : memref<1x8x1024xbf16, #tpu.memory_space<vmem>>, vector<1x8x1024xbf16>,
    %c0_16 = arith.constant 0 : index
    %c0_17 = arith.constant 0 : index
    %35 = vector.load %arg4[%c0_16, %c0_17] : memref<16x8xf32, #tpu.memory_space<vmem>>, vector<16x8xf32>
    %cst_18 = arith.constant dense<0.000000e+00> : vector<16x1xf32>
    %36 = tpu.matmul %35, %16, %cst_18 {dimension_numbers = #tpu.dot_dimension_numbers<[1], [0], [0], [1], [0, 0, 1, 1], [], []>} : vector<16x8xf32>, vector<8x1xf32>, vector<16x1xf32> -> vector<16x1xf32>
    %c0_19 = arith.constant 0 : index
    %c0_20 = arith.constant 0 : index
    %37 = vector.load %arg5[%c0_19, %c0_20] : memref<16x8xf32, #tpu.memory_space<vmem>>, vector<16x8xf32>
    %cst_21 = arith.constant dense<0.000000e+00> : vector<16x1xf32>
    %38 = tpu.matmul %37, %23, %cst_21 {dimension_numbers = #tpu.dot_dimension_numbers<[1], [0], [0], [1], [0, 0, 1, 1], [], []>} : vector<16x8xf32>, vector<8x1xf32>, vector<16x1xf32> -> vector<16x1xf32>
    %39 = arith.addf %36, %38 : vector<16x1xf32>
    %c0_22 = arith.constant 0 : index
    %c0_23 = arith.constant 0 : index
    %40 = vector.load %arg6[%c0_22, %c0_23] : memref<16x1xf32, #tpu.memory_space<vmem>>, vector<16x1xf32>
    %41 = arith.addf %39, %40 : vector<16x1xf32>
    %c0_24 = arith.constant 0 : index
    %c0_25 = arith.constant 0 : index
    %c0_26 = arith.constant 0 : index
    %42 = vector.load %arg8[%c0_24, %c0_25, %c0_26] : memref<1x16x1xf32, #tpu.memory_space<vmem>>, vector<1x16x1xf32>
    %43 = vector.shape_cast %42 : vector<1x16x1xf32> to vector<16x1xf32>
    %44 = vector.shape_cast %41 : vector<16x1xf32> to vector<1x16x1xf32>
    tpu.vector_store %arg8[%c0_24, %c0_25, %c0_26], %44 {strides = array<i32>} : memref<1x16x1xf32, #tpu.memory_space<vmem>>, vector<1x16x1xf32>,
    return
  }
  func.func @transform_0(%arg0: i32) -> (i32, i32, i32) {
    %c0_i32 = arith.constant 0 : i32
    %c0_i32_0 = arith.constant 0 : i32
    %c0_i32_1 = arith.constant 0 : i32
    return %arg0, %c0_i32, %c0_i32_0 : i32, i32, i32
  }
  func.func @transform_1(%arg0: i32) -> (i32, i32) {
    %c0_i32 = arith.constant 0 : i32
    %c0_i32_0 = arith.constant 0 : i32
    %c0_i32_1 = arith.constant 0 : i32
    return %c0_i32, %c0_i32_0 : i32, i32
  }
  func.func @transform_2(%arg0: i32) -> (i32, i32) {
    %c0_i32 = arith.constant 0 : i32
    %c0_i32_0 = arith.constant 0 : i32
    %c0_i32_1 = arith.constant 0 : i32
    return %c0_i32, %c0_i32_0 : i32, i32
  }
  func.func @transform_3(%arg0: i32) -> (i32, i32) {
    %c0_i32 = arith.constant 0 : i32
    %c0_i32_0 = arith.constant 0 : i32
    %c0_i32_1 = arith.constant 0 : i32
    return %c0_i32, %c0_i32_0 : i32, i32
  }
  func.func @transform_4(%arg0: i32) -> (i32, i32) {
    %c0_i32 = arith.constant 0 : i32
    %c0_i32_0 = arith.constant 0 : i32
    %c0_i32_1 = arith.constant 0 : i32
    return %c0_i32, %c0_i32_0 : i32, i32
  }
  func.func @transform_5(%arg0: i32) -> (i32, i32) {
    %c0_i32 = arith.constant 0 : i32
    %c0_i32_0 = arith.constant 0 : i32
    %c0_i32_1 = arith.constant 0 : i32
    return %c0_i32, %c0_i32_0 : i32, i32
  }
  func.func @transform_6(%arg0: i32) -> (i32, i32, i32) {
    %c0_i32 = arith.constant 0 : i32
    %c0_i32_0 = arith.constant 0 : i32
    %c0_i32_1 = arith.constant 0 : i32
    return %arg0, %c0_i32, %c0_i32_0 : i32, i32, i32
  }
  func.func @transform_7(%arg0: i32) -> (i32, i32, i32) {
    %c0_i32 = arith.constant 0 : i32
    %c0_i32_0 = arith.constant 0 : i32
    %c0_i32_1 = arith.constant 0 : i32
    return %arg0, %c0_i32, %c0_i32_0 : i32, i32, i32
  }
}

module attributes {stable_mosaic.version = 11 : i64} {
  func.func @_stage_kernel(%arg0: i32, %arg1: memref<1x128x256xbf16, #tpu.memory_space<vmem>>, %arg2: memref<16x128xbf16, #tpu.memory_space<vmem>>, %arg3: memref<16x1xf32, #tpu.memory_space<vmem>>, %arg4: memref<16x16xf32, #tpu.memory_space<vmem>>, %arg5: memref<16x16xf32, #tpu.memory_space<vmem>>, %arg6: memref<16x1xf32, #tpu.memory_space<vmem>>, %arg7: memref<1x16x256xbf16, #tpu.memory_space<vmem>>, %arg8: memref<1x16x1xf32, #tpu.memory_space<vmem>>) attributes {dimension_semantics = [#tpu.dimension_semantics<parallel>], iteration_bounds = array<i64: 2>, scalar_prefetch = 0 : i64, scratch_operands = 0 : i64, tpu.core_type = #tpu.core_type<tc>, window_params = [{transform_indices = @transform_0, window_bounds = array<i64: 1, 128, 256>}, {pipeline_mode = #tpu.pipeline_mode<synchronous>, transform_indices = @transform_1, window_bounds = array<i64: 16, 128>}, {pipeline_mode = #tpu.pipeline_mode<synchronous>, transform_indices = @transform_2, window_bounds = array<i64: 16, 1>}, {pipeline_mode = #tpu.pipeline_mode<synchronous>, transform_indices = @transform_3, window_bounds = array<i64: 16, 16>}, {pipeline_mode = #tpu.pipeline_mode<synchronous>, transform_indices = @transform_4, window_bounds = array<i64: 16, 16>}, {pipeline_mode = #tpu.pipeline_mode<synchronous>, transform_indices = @transform_5, window_bounds = array<i64: 16, 1>}, {transform_indices = @transform_6, window_bounds = array<i64: 1, 16, 256>}, {transform_indices = @transform_7, window_bounds = array<i64: 1, 16, 1>}]} {
    %c0 = arith.constant 0 : index
    %c0_0 = arith.constant 0 : index
    %0 = vector.load %arg2[%c0, %c0_0] : memref<16x128xbf16, #tpu.memory_space<vmem>>, vector<16x128xbf16>
    %c0_1 = arith.constant 0 : index
    %c0_2 = arith.constant 0 : index
    %c0_3 = arith.constant 0 : index
    %1 = vector.load %arg1[%c0_1, %c0_2, %c0_3] : memref<1x128x256xbf16, #tpu.memory_space<vmem>>, vector<1x128x256xbf16>
    %2 = vector.shape_cast %1 : vector<1x128x256xbf16> to vector<128x256xbf16>
    %cst = arith.constant dense<0.000000e+00> : vector<16x256xf32>
    %3 = tpu.matmul %0, %2, %cst {dimension_numbers = #tpu.dot_dimension_numbers<[1], [0], [0], [1], [0, 0, 1, 1], [], []>} : vector<16x128xbf16>, vector<128x256xbf16>, vector<16x256xf32> -> vector<16x256xf32>
    %c0_4 = arith.constant 0 : index
    %c0_5 = arith.constant 0 : index
    %4 = vector.load %arg3[%c0_4, %c0_5] : memref<16x1xf32, #tpu.memory_space<vmem>>, vector<16x1xf32>
    %5 = vector.broadcast %4 : vector<16x1xf32> to vector<16x256xf32>
    %6 = arith.addf %3, %5 : vector<16x256xf32>
    %cst_6 = arith.constant 2.000000e-01 : f32
    %7 = vector.broadcast %cst_6 : f32 to vector<16x256xf32>
    %8 = arith.mulf %7, %6 : vector<16x256xf32>
    %9 = arith.maximumf %6, %8 : vector<16x256xf32>
    %cst_7 = arith.constant dense<0.000000e+00> : vector<16xf32>
    %10 = vector.multi_reduction <add>, %9, %cst_7 [1] : vector<16x256xf32> to vector<16xf32>
    %11 = vector.shape_cast %10 : vector<16xf32> to vector<16x1xf32>
    %12 = arith.mulf %9, %9 : vector<16x256xf32>
    %cst_8 = arith.constant dense<0.000000e+00> : vector<16xf32>
    %13 = vector.multi_reduction <add>, %12, %cst_8 [1] : vector<16x256xf32> to vector<16xf32>
    %14 = vector.shape_cast %13 : vector<16xf32> to vector<16x1xf32>
    %cst_9 = arith.constant 3.906250e-03 : f32
    %15 = vector.broadcast %cst_9 : f32 to vector<16x1xf32>
    %16 = arith.mulf %11, %15 : vector<16x1xf32>
    %cst_10 = arith.constant 3.906250e-03 : f32
    %17 = vector.broadcast %cst_10 : f32 to vector<16x1xf32>
    %18 = arith.mulf %14, %17 : vector<16x1xf32>
    %19 = arith.mulf %16, %16 : vector<16x1xf32>
    %20 = arith.subf %18, %19 : vector<16x1xf32>
    %cst_11 = arith.constant 0.000000e+00 : f32
    %21 = vector.broadcast %cst_11 : f32 to vector<16x1xf32>
    %22 = arith.maximumf %20, %21 : vector<16x1xf32>
    %23 = math.sqrt %22 : vector<16x1xf32>
    %cst_12 = arith.constant 9.99999974E-6 : f32
    %24 = vector.broadcast %cst_12 : f32 to vector<16x1xf32>
    %25 = arith.addf %22, %24 : vector<16x1xf32>
    %26 = math.rsqrt %25 : vector<16x1xf32>
    %27 = vector.broadcast %16 : vector<16x1xf32> to vector<16x256xf32>
    %28 = arith.subf %9, %27 : vector<16x256xf32>
    %29 = vector.broadcast %26 : vector<16x1xf32> to vector<16x256xf32>
    %30 = arith.mulf %28, %29 : vector<16x256xf32>
    %31 = arith.truncf %30 : vector<16x256xf32> to vector<16x256xbf16>
    %c0_13 = arith.constant 0 : index
    %c0_14 = arith.constant 0 : index
    %c0_15 = arith.constant 0 : index
    %32 = vector.load %arg7[%c0_13, %c0_14, %c0_15] : memref<1x16x256xbf16, #tpu.memory_space<vmem>>, vector<1x16x256xbf16>
    %33 = vector.shape_cast %32 : vector<1x16x256xbf16> to vector<16x256xbf16>
    %34 = vector.shape_cast %31 : vector<16x256xbf16> to vector<1x16x256xbf16>
    tpu.vector_store %arg7[%c0_13, %c0_14, %c0_15], %34 {strides = array<i32>} : memref<1x16x256xbf16, #tpu.memory_space<vmem>>, vector<1x16x256xbf16>,
    %c0_16 = arith.constant 0 : index
    %c0_17 = arith.constant 0 : index
    %35 = vector.load %arg4[%c0_16, %c0_17] : memref<16x16xf32, #tpu.memory_space<vmem>>, vector<16x16xf32>
    %cst_18 = arith.constant dense<0.000000e+00> : vector<16x1xf32>
    %36 = tpu.matmul %35, %16, %cst_18 {dimension_numbers = #tpu.dot_dimension_numbers<[1], [0], [0], [1], [0, 0, 1, 1], [], []>} : vector<16x16xf32>, vector<16x1xf32>, vector<16x1xf32> -> vector<16x1xf32>
    %c0_19 = arith.constant 0 : index
    %c0_20 = arith.constant 0 : index
    %37 = vector.load %arg5[%c0_19, %c0_20] : memref<16x16xf32, #tpu.memory_space<vmem>>, vector<16x16xf32>
    %cst_21 = arith.constant dense<0.000000e+00> : vector<16x1xf32>
    %38 = tpu.matmul %37, %23, %cst_21 {dimension_numbers = #tpu.dot_dimension_numbers<[1], [0], [0], [1], [0, 0, 1, 1], [], []>} : vector<16x16xf32>, vector<16x1xf32>, vector<16x1xf32> -> vector<16x1xf32>
    %39 = arith.addf %36, %38 : vector<16x1xf32>
    %c0_22 = arith.constant 0 : index
    %c0_23 = arith.constant 0 : index
    %40 = vector.load %arg6[%c0_22, %c0_23] : memref<16x1xf32, #tpu.memory_space<vmem>>, vector<16x1xf32>
    %41 = arith.addf %39, %40 : vector<16x1xf32>
    %c0_24 = arith.constant 0 : index
    %c0_25 = arith.constant 0 : index
    %c0_26 = arith.constant 0 : index
    %42 = vector.load %arg8[%c0_24, %c0_25, %c0_26] : memref<1x16x1xf32, #tpu.memory_space<vmem>>, vector<1x16x1xf32>
    %43 = vector.shape_cast %42 : vector<1x16x1xf32> to vector<16x1xf32>
    %44 = vector.shape_cast %41 : vector<16x1xf32> to vector<1x16x1xf32>
    tpu.vector_store %arg8[%c0_24, %c0_25, %c0_26], %44 {strides = array<i32>} : memref<1x16x1xf32, #tpu.memory_space<vmem>>, vector<1x16x1xf32>,
    return
  }
  func.func @transform_0(%arg0: i32) -> (i32, i32, i32) {
    %c0_i32 = arith.constant 0 : i32
    %c0_i32_0 = arith.constant 0 : i32
    %c0_i32_1 = arith.constant 0 : i32
    return %arg0, %c0_i32, %c0_i32_0 : i32, i32, i32
  }
  func.func @transform_1(%arg0: i32) -> (i32, i32) {
    %c0_i32 = arith.constant 0 : i32
    %c0_i32_0 = arith.constant 0 : i32
    %c0_i32_1 = arith.constant 0 : i32
    return %c0_i32, %c0_i32_0 : i32, i32
  }
  func.func @transform_2(%arg0: i32) -> (i32, i32) {
    %c0_i32 = arith.constant 0 : i32
    %c0_i32_0 = arith.constant 0 : i32
    %c0_i32_1 = arith.constant 0 : i32
    return %c0_i32, %c0_i32_0 : i32, i32
  }
  func.func @transform_3(%arg0: i32) -> (i32, i32) {
    %c0_i32 = arith.constant 0 : i32
    %c0_i32_0 = arith.constant 0 : i32
    %c0_i32_1 = arith.constant 0 : i32
    return %c0_i32, %c0_i32_0 : i32, i32
  }
  func.func @transform_4(%arg0: i32) -> (i32, i32) {
    %c0_i32 = arith.constant 0 : i32
    %c0_i32_0 = arith.constant 0 : i32
    %c0_i32_1 = arith.constant 0 : i32
    return %c0_i32, %c0_i32_0 : i32, i32
  }
  func.func @transform_5(%arg0: i32) -> (i32, i32) {
    %c0_i32 = arith.constant 0 : i32
    %c0_i32_0 = arith.constant 0 : i32
    %c0_i32_1 = arith.constant 0 : i32
    return %c0_i32, %c0_i32_0 : i32, i32
  }
  func.func @transform_6(%arg0: i32) -> (i32, i32, i32) {
    %c0_i32 = arith.constant 0 : i32
    %c0_i32_0 = arith.constant 0 : i32
    %c0_i32_1 = arith.constant 0 : i32
    return %arg0, %c0_i32, %c0_i32_0 : i32, i32, i32
  }
  func.func @transform_7(%arg0: i32) -> (i32, i32, i32) {
    %c0_i32 = arith.constant 0 : i32
    %c0_i32_0 = arith.constant 0 : i32
    %c0_i32_1 = arith.constant 0 : i32
    return %arg0, %c0_i32, %c0_i32_0 : i32, i32, i32
  }
}

module attributes {stable_mosaic.version = 11 : i64} {
  func.func @_stage_kernel(%arg0: i32, %arg1: memref<1x144x256xbf16, #tpu.memory_space<vmem>>, %arg2: memref<16x144xbf16, #tpu.memory_space<vmem>>, %arg3: memref<16x1xf32, #tpu.memory_space<vmem>>, %arg4: memref<16x16xf32, #tpu.memory_space<vmem>>, %arg5: memref<16x16xf32, #tpu.memory_space<vmem>>, %arg6: memref<16x1xf32, #tpu.memory_space<vmem>>, %arg7: memref<1x16x256xbf16, #tpu.memory_space<vmem>>, %arg8: memref<1x16x1xf32, #tpu.memory_space<vmem>>) attributes {dimension_semantics = [#tpu.dimension_semantics<parallel>], iteration_bounds = array<i64: 2>, scalar_prefetch = 0 : i64, scratch_operands = 0 : i64, tpu.core_type = #tpu.core_type<tc>, window_params = [{transform_indices = @transform_0, window_bounds = array<i64: 1, 144, 256>}, {pipeline_mode = #tpu.pipeline_mode<synchronous>, transform_indices = @transform_1, window_bounds = array<i64: 16, 144>}, {pipeline_mode = #tpu.pipeline_mode<synchronous>, transform_indices = @transform_2, window_bounds = array<i64: 16, 1>}, {pipeline_mode = #tpu.pipeline_mode<synchronous>, transform_indices = @transform_3, window_bounds = array<i64: 16, 16>}, {pipeline_mode = #tpu.pipeline_mode<synchronous>, transform_indices = @transform_4, window_bounds = array<i64: 16, 16>}, {pipeline_mode = #tpu.pipeline_mode<synchronous>, transform_indices = @transform_5, window_bounds = array<i64: 16, 1>}, {transform_indices = @transform_6, window_bounds = array<i64: 1, 16, 256>}, {transform_indices = @transform_7, window_bounds = array<i64: 1, 16, 1>}]} {
    %c0 = arith.constant 0 : index
    %c0_0 = arith.constant 0 : index
    %0 = vector.load %arg2[%c0, %c0_0] : memref<16x144xbf16, #tpu.memory_space<vmem>>, vector<16x144xbf16>
    %c0_1 = arith.constant 0 : index
    %c0_2 = arith.constant 0 : index
    %c0_3 = arith.constant 0 : index
    %1 = vector.load %arg1[%c0_1, %c0_2, %c0_3] : memref<1x144x256xbf16, #tpu.memory_space<vmem>>, vector<1x144x256xbf16>
    %2 = vector.shape_cast %1 : vector<1x144x256xbf16> to vector<144x256xbf16>
    %cst = arith.constant dense<0.000000e+00> : vector<16x256xf32>
    %3 = tpu.matmul %0, %2, %cst {dimension_numbers = #tpu.dot_dimension_numbers<[1], [0], [0], [1], [0, 0, 1, 1], [], []>} : vector<16x144xbf16>, vector<144x256xbf16>, vector<16x256xf32> -> vector<16x256xf32>
    %c0_4 = arith.constant 0 : index
    %c0_5 = arith.constant 0 : index
    %4 = vector.load %arg3[%c0_4, %c0_5] : memref<16x1xf32, #tpu.memory_space<vmem>>, vector<16x1xf32>
    %5 = vector.broadcast %4 : vector<16x1xf32> to vector<16x256xf32>
    %6 = arith.addf %3, %5 : vector<16x256xf32>
    %cst_6 = arith.constant 2.000000e-01 : f32
    %7 = vector.broadcast %cst_6 : f32 to vector<16x256xf32>
    %8 = arith.mulf %7, %6 : vector<16x256xf32>
    %9 = arith.maximumf %6, %8 : vector<16x256xf32>
    %cst_7 = arith.constant dense<0.000000e+00> : vector<16xf32>
    %10 = vector.multi_reduction <add>, %9, %cst_7 [1] : vector<16x256xf32> to vector<16xf32>
    %11 = vector.shape_cast %10 : vector<16xf32> to vector<16x1xf32>
    %12 = arith.mulf %9, %9 : vector<16x256xf32>
    %cst_8 = arith.constant dense<0.000000e+00> : vector<16xf32>
    %13 = vector.multi_reduction <add>, %12, %cst_8 [1] : vector<16x256xf32> to vector<16xf32>
    %14 = vector.shape_cast %13 : vector<16xf32> to vector<16x1xf32>
    %cst_9 = arith.constant 3.906250e-03 : f32
    %15 = vector.broadcast %cst_9 : f32 to vector<16x1xf32>
    %16 = arith.mulf %11, %15 : vector<16x1xf32>
    %cst_10 = arith.constant 3.906250e-03 : f32
    %17 = vector.broadcast %cst_10 : f32 to vector<16x1xf32>
    %18 = arith.mulf %14, %17 : vector<16x1xf32>
    %19 = arith.mulf %16, %16 : vector<16x1xf32>
    %20 = arith.subf %18, %19 : vector<16x1xf32>
    %cst_11 = arith.constant 0.000000e+00 : f32
    %21 = vector.broadcast %cst_11 : f32 to vector<16x1xf32>
    %22 = arith.maximumf %20, %21 : vector<16x1xf32>
    %23 = math.sqrt %22 : vector<16x1xf32>
    %cst_12 = arith.constant 9.99999974E-6 : f32
    %24 = vector.broadcast %cst_12 : f32 to vector<16x1xf32>
    %25 = arith.addf %22, %24 : vector<16x1xf32>
    %26 = math.rsqrt %25 : vector<16x1xf32>
    %27 = vector.broadcast %16 : vector<16x1xf32> to vector<16x256xf32>
    %28 = arith.subf %9, %27 : vector<16x256xf32>
    %29 = vector.broadcast %26 : vector<16x1xf32> to vector<16x256xf32>
    %30 = arith.mulf %28, %29 : vector<16x256xf32>
    %31 = arith.truncf %30 : vector<16x256xf32> to vector<16x256xbf16>
    %c0_13 = arith.constant 0 : index
    %c0_14 = arith.constant 0 : index
    %c0_15 = arith.constant 0 : index
    %32 = vector.load %arg7[%c0_13, %c0_14, %c0_15] : memref<1x16x256xbf16, #tpu.memory_space<vmem>>, vector<1x16x256xbf16>
    %33 = vector.shape_cast %32 : vector<1x16x256xbf16> to vector<16x256xbf16>
    %34 = vector.shape_cast %31 : vector<16x256xbf16> to vector<1x16x256xbf16>
    tpu.vector_store %arg7[%c0_13, %c0_14, %c0_15], %34 {strides = array<i32>} : memref<1x16x256xbf16, #tpu.memory_space<vmem>>, vector<1x16x256xbf16>,
    %c0_16 = arith.constant 0 : index
    %c0_17 = arith.constant 0 : index
    %35 = vector.load %arg4[%c0_16, %c0_17] : memref<16x16xf32, #tpu.memory_space<vmem>>, vector<16x16xf32>
    %cst_18 = arith.constant dense<0.000000e+00> : vector<16x1xf32>
    %36 = tpu.matmul %35, %16, %cst_18 {dimension_numbers = #tpu.dot_dimension_numbers<[1], [0], [0], [1], [0, 0, 1, 1], [], []>} : vector<16x16xf32>, vector<16x1xf32>, vector<16x1xf32> -> vector<16x1xf32>
    %c0_19 = arith.constant 0 : index
    %c0_20 = arith.constant 0 : index
    %37 = vector.load %arg5[%c0_19, %c0_20] : memref<16x16xf32, #tpu.memory_space<vmem>>, vector<16x16xf32>
    %cst_21 = arith.constant dense<0.000000e+00> : vector<16x1xf32>
    %38 = tpu.matmul %37, %23, %cst_21 {dimension_numbers = #tpu.dot_dimension_numbers<[1], [0], [0], [1], [0, 0, 1, 1], [], []>} : vector<16x16xf32>, vector<16x1xf32>, vector<16x1xf32> -> vector<16x1xf32>
    %39 = arith.addf %36, %38 : vector<16x1xf32>
    %c0_22 = arith.constant 0 : index
    %c0_23 = arith.constant 0 : index
    %40 = vector.load %arg6[%c0_22, %c0_23] : memref<16x1xf32, #tpu.memory_space<vmem>>, vector<16x1xf32>
    %41 = arith.addf %39, %40 : vector<16x1xf32>
    %c0_24 = arith.constant 0 : index
    %c0_25 = arith.constant 0 : index
    %c0_26 = arith.constant 0 : index
    %42 = vector.load %arg8[%c0_24, %c0_25, %c0_26] : memref<1x16x1xf32, #tpu.memory_space<vmem>>, vector<1x16x1xf32>
    %43 = vector.shape_cast %42 : vector<1x16x1xf32> to vector<16x1xf32>
    %44 = vector.shape_cast %41 : vector<16x1xf32> to vector<1x16x1xf32>
    tpu.vector_store %arg8[%c0_24, %c0_25, %c0_26], %44 {strides = array<i32>} : memref<1x16x1xf32, #tpu.memory_space<vmem>>, vector<1x16x1xf32>,
    return
  }
  func.func @transform_0(%arg0: i32) -> (i32, i32, i32) {
    %c0_i32 = arith.constant 0 : i32
    %c0_i32_0 = arith.constant 0 : i32
    %c0_i32_1 = arith.constant 0 : i32
    return %arg0, %c0_i32, %c0_i32_0 : i32, i32, i32
  }
  func.func @transform_1(%arg0: i32) -> (i32, i32) {
    %c0_i32 = arith.constant 0 : i32
    %c0_i32_0 = arith.constant 0 : i32
    %c0_i32_1 = arith.constant 0 : i32
    return %c0_i32, %c0_i32_0 : i32, i32
  }
  func.func @transform_2(%arg0: i32) -> (i32, i32) {
    %c0_i32 = arith.constant 0 : i32
    %c0_i32_0 = arith.constant 0 : i32
    %c0_i32_1 = arith.constant 0 : i32
    return %c0_i32, %c0_i32_0 : i32, i32
  }
  func.func @transform_3(%arg0: i32) -> (i32, i32) {
    %c0_i32 = arith.constant 0 : i32
    %c0_i32_0 = arith.constant 0 : i32
    %c0_i32_1 = arith.constant 0 : i32
    return %c0_i32, %c0_i32_0 : i32, i32
  }
  func.func @transform_4(%arg0: i32) -> (i32, i32) {
    %c0_i32 = arith.constant 0 : i32
    %c0_i32_0 = arith.constant 0 : i32
    %c0_i32_1 = arith.constant 0 : i32
    return %c0_i32, %c0_i32_0 : i32, i32
  }
  func.func @transform_5(%arg0: i32) -> (i32, i32) {
    %c0_i32 = arith.constant 0 : i32
    %c0_i32_0 = arith.constant 0 : i32
    %c0_i32_1 = arith.constant 0 : i32
    return %c0_i32, %c0_i32_0 : i32, i32
  }
  func.func @transform_6(%arg0: i32) -> (i32, i32, i32) {
    %c0_i32 = arith.constant 0 : i32
    %c0_i32_0 = arith.constant 0 : i32
    %c0_i32_1 = arith.constant 0 : i32
    return %arg0, %c0_i32, %c0_i32_0 : i32, i32, i32
  }
  func.func @transform_7(%arg0: i32) -> (i32, i32, i32) {
    %c0_i32 = arith.constant 0 : i32
    %c0_i32_0 = arith.constant 0 : i32
    %c0_i32_1 = arith.constant 0 : i32
    return %arg0, %c0_i32, %c0_i32_0 : i32, i32, i32
  }
}

module attributes {stable_mosaic.version = 11 : i64} {
  func.func @_stage_kernel_batched(%arg0: memref<256x128xbf16, #tpu.memory_space<vmem>>, %arg1: memref<16x256xbf16, #tpu.memory_space<vmem>>, %arg2: memref<16x1xf32, #tpu.memory_space<vmem>>, %arg3: memref<128x2xf32, #tpu.memory_space<vmem>>, %arg4: memref<2x128xf32, #tpu.memory_space<vmem>>, %arg5: memref<16x16xf32, #tpu.memory_space<vmem>>, %arg6: memref<16x16xf32, #tpu.memory_space<vmem>>, %arg7: memref<16x1xf32, #tpu.memory_space<vmem>>, %arg8: memref<16x128xbf16, #tpu.memory_space<vmem>>, %arg9: memref<16x2xf32, #tpu.memory_space<vmem>>) attributes {dimension_semantics = [], scalar_prefetch = 0 : i64, scratch_operands = 0 : i64, tpu.core_type = #tpu.core_type<tc>} {
    %c0 = arith.constant 0 : index
    %c0_0 = arith.constant 0 : index
    %0 = vector.load %arg1[%c0, %c0_0] : memref<16x256xbf16, #tpu.memory_space<vmem>>, vector<16x256xbf16>
    %c0_1 = arith.constant 0 : index
    %c0_2 = arith.constant 0 : index
    %1 = vector.load %arg0[%c0_1, %c0_2] : memref<256x128xbf16, #tpu.memory_space<vmem>>, vector<256x128xbf16>
    %cst = arith.constant dense<0.000000e+00> : vector<16x128xf32>
    %2 = tpu.matmul %0, %1, %cst {dimension_numbers = #tpu.dot_dimension_numbers<[1], [0], [0], [1], [0, 0, 1, 1], [], []>} : vector<16x256xbf16>, vector<256x128xbf16>, vector<16x128xf32> -> vector<16x128xf32>
    %c0_3 = arith.constant 0 : index
    %c0_4 = arith.constant 0 : index
    %3 = vector.load %arg2[%c0_3, %c0_4] : memref<16x1xf32, #tpu.memory_space<vmem>>, vector<16x1xf32>
    %4 = vector.broadcast %3 : vector<16x1xf32> to vector<16x128xf32>
    %5 = arith.addf %2, %4 : vector<16x128xf32>
    %cst_5 = arith.constant 2.000000e-01 : f32
    %6 = vector.broadcast %cst_5 : f32 to vector<16x128xf32>
    %7 = arith.mulf %6, %5 : vector<16x128xf32>
    %8 = arith.maximumf %5, %7 : vector<16x128xf32>
    %c0_6 = arith.constant 0 : index
    %c0_7 = arith.constant 0 : index
    %9 = vector.load %arg3[%c0_6, %c0_7] : memref<128x2xf32, #tpu.memory_space<vmem>>, vector<128x2xf32>
    %cst_8 = arith.constant dense<0.000000e+00> : vector<16x2xf32>
    %10 = tpu.matmul %8, %9, %cst_8 {dimension_numbers = #tpu.dot_dimension_numbers<[1], [0], [0], [1], [0, 0, 1, 1], [], []>} : vector<16x128xf32>, vector<128x2xf32>, vector<16x2xf32> -> vector<16x2xf32>
    %11 = arith.mulf %8, %8 : vector<16x128xf32>
    %c0_9 = arith.constant 0 : index
    %c0_10 = arith.constant 0 : index
    %12 = vector.load %arg3[%c0_9, %c0_10] : memref<128x2xf32, #tpu.memory_space<vmem>>, vector<128x2xf32>
    %cst_11 = arith.constant dense<0.000000e+00> : vector<16x2xf32>
    %13 = tpu.matmul %11, %12, %cst_11 {dimension_numbers = #tpu.dot_dimension_numbers<[1], [0], [0], [1], [0, 0, 1, 1], [], []>} : vector<16x128xf32>, vector<128x2xf32>, vector<16x2xf32> -> vector<16x2xf32>
    %cst_12 = arith.constant 1.562500e-02 : f32
    %14 = vector.broadcast %cst_12 : f32 to vector<16x2xf32>
    %15 = arith.mulf %10, %14 : vector<16x2xf32>
    %cst_13 = arith.constant 1.562500e-02 : f32
    %16 = vector.broadcast %cst_13 : f32 to vector<16x2xf32>
    %17 = arith.mulf %13, %16 : vector<16x2xf32>
    %18 = arith.mulf %15, %15 : vector<16x2xf32>
    %19 = arith.subf %17, %18 : vector<16x2xf32>
    %cst_14 = arith.constant 0.000000e+00 : f32
    %20 = vector.broadcast %cst_14 : f32 to vector<16x2xf32>
    %21 = arith.maximumf %19, %20 : vector<16x2xf32>
    %22 = math.sqrt %21 : vector<16x2xf32>
    %cst_15 = arith.constant 9.99999974E-6 : f32
    %23 = vector.broadcast %cst_15 : f32 to vector<16x2xf32>
    %24 = arith.addf %21, %23 : vector<16x2xf32>
    %25 = math.rsqrt %24 : vector<16x2xf32>
    %c0_16 = arith.constant 0 : index
    %c0_17 = arith.constant 0 : index
    %26 = vector.load %arg4[%c0_16, %c0_17] : memref<2x128xf32, #tpu.memory_space<vmem>>, vector<2x128xf32>
    %cst_18 = arith.constant dense<0.000000e+00> : vector<16x128xf32>
    %27 = tpu.matmul %15, %26, %cst_18 {dimension_numbers = #tpu.dot_dimension_numbers<[1], [0], [0], [1], [0, 0, 1, 1], [], []>} : vector<16x2xf32>, vector<2x128xf32>, vector<16x128xf32> -> vector<16x128xf32>
    %c0_19 = arith.constant 0 : index
    %c0_20 = arith.constant 0 : index
    %28 = vector.load %arg4[%c0_19, %c0_20] : memref<2x128xf32, #tpu.memory_space<vmem>>, vector<2x128xf32>
    %cst_21 = arith.constant dense<0.000000e+00> : vector<16x128xf32>
    %29 = tpu.matmul %25, %28, %cst_21 {dimension_numbers = #tpu.dot_dimension_numbers<[1], [0], [0], [1], [0, 0, 1, 1], [], []>} : vector<16x2xf32>, vector<2x128xf32>, vector<16x128xf32> -> vector<16x128xf32>
    %30 = arith.subf %8, %27 : vector<16x128xf32>
    %31 = arith.mulf %30, %29 : vector<16x128xf32>
    %32 = arith.truncf %31 : vector<16x128xf32> to vector<16x128xbf16>
    %c0_22 = arith.constant 0 : index
    %c0_23 = arith.constant 0 : index
    %33 = vector.load %arg8[%c0_22, %c0_23] : memref<16x128xbf16, #tpu.memory_space<vmem>>, vector<16x128xbf16>
    tpu.vector_store %arg8[%c0_22, %c0_23], %32 {strides = array<i32>} : memref<16x128xbf16, #tpu.memory_space<vmem>>, vector<16x128xbf16>,
    %c0_24 = arith.constant 0 : index
    %c0_25 = arith.constant 0 : index
    %34 = vector.load %arg5[%c0_24, %c0_25] : memref<16x16xf32, #tpu.memory_space<vmem>>, vector<16x16xf32>
    %cst_26 = arith.constant dense<0.000000e+00> : vector<16x2xf32>
    %35 = tpu.matmul %34, %15, %cst_26 {dimension_numbers = #tpu.dot_dimension_numbers<[1], [0], [0], [1], [0, 0, 1, 1], [], []>} : vector<16x16xf32>, vector<16x2xf32>, vector<16x2xf32> -> vector<16x2xf32>
    %c0_27 = arith.constant 0 : index
    %c0_28 = arith.constant 0 : index
    %36 = vector.load %arg6[%c0_27, %c0_28] : memref<16x16xf32, #tpu.memory_space<vmem>>, vector<16x16xf32>
    %cst_29 = arith.constant dense<0.000000e+00> : vector<16x2xf32>
    %37 = tpu.matmul %36, %22, %cst_29 {dimension_numbers = #tpu.dot_dimension_numbers<[1], [0], [0], [1], [0, 0, 1, 1], [], []>} : vector<16x16xf32>, vector<16x2xf32>, vector<16x2xf32> -> vector<16x2xf32>
    %38 = arith.addf %35, %37 : vector<16x2xf32>
    %c0_30 = arith.constant 0 : index
    %c0_31 = arith.constant 0 : index
    %39 = vector.load %arg7[%c0_30, %c0_31] : memref<16x1xf32, #tpu.memory_space<vmem>>, vector<16x1xf32>
    %40 = vector.broadcast %39 : vector<16x1xf32> to vector<16x2xf32>
    %41 = arith.addf %38, %40 : vector<16x2xf32>
    %c0_32 = arith.constant 0 : index
    %c0_33 = arith.constant 0 : index
    %42 = vector.load %arg9[%c0_32, %c0_33] : memref<16x2xf32, #tpu.memory_space<vmem>>, vector<16x2xf32>
    tpu.vector_store %arg9[%c0_32, %c0_33], %41 {strides = array<i32>} : memref<16x2xf32, #tpu.memory_space<vmem>>, vector<16x2xf32>,
    return
  }
}

module attributes {stable_mosaic.version = 11 : i64} {
  func.func @_stage_kernel_batched(%arg0: memref<144x128xbf16, #tpu.memory_space<vmem>>, %arg1: memref<16x144xbf16, #tpu.memory_space<vmem>>, %arg2: memref<16x1xf32, #tpu.memory_space<vmem>>, %arg3: memref<128x2xf32, #tpu.memory_space<vmem>>, %arg4: memref<2x128xf32, #tpu.memory_space<vmem>>, %arg5: memref<16x16xf32, #tpu.memory_space<vmem>>, %arg6: memref<16x16xf32, #tpu.memory_space<vmem>>, %arg7: memref<16x1xf32, #tpu.memory_space<vmem>>, %arg8: memref<16x128xbf16, #tpu.memory_space<vmem>>, %arg9: memref<16x2xf32, #tpu.memory_space<vmem>>) attributes {dimension_semantics = [], scalar_prefetch = 0 : i64, scratch_operands = 0 : i64, tpu.core_type = #tpu.core_type<tc>} {
    %c0 = arith.constant 0 : index
    %c0_0 = arith.constant 0 : index
    %0 = vector.load %arg1[%c0, %c0_0] : memref<16x144xbf16, #tpu.memory_space<vmem>>, vector<16x144xbf16>
    %c0_1 = arith.constant 0 : index
    %c0_2 = arith.constant 0 : index
    %1 = vector.load %arg0[%c0_1, %c0_2] : memref<144x128xbf16, #tpu.memory_space<vmem>>, vector<144x128xbf16>
    %cst = arith.constant dense<0.000000e+00> : vector<16x128xf32>
    %2 = tpu.matmul %0, %1, %cst {dimension_numbers = #tpu.dot_dimension_numbers<[1], [0], [0], [1], [0, 0, 1, 1], [], []>} : vector<16x144xbf16>, vector<144x128xbf16>, vector<16x128xf32> -> vector<16x128xf32>
    %c0_3 = arith.constant 0 : index
    %c0_4 = arith.constant 0 : index
    %3 = vector.load %arg2[%c0_3, %c0_4] : memref<16x1xf32, #tpu.memory_space<vmem>>, vector<16x1xf32>
    %4 = vector.broadcast %3 : vector<16x1xf32> to vector<16x128xf32>
    %5 = arith.addf %2, %4 : vector<16x128xf32>
    %cst_5 = arith.constant 2.000000e-01 : f32
    %6 = vector.broadcast %cst_5 : f32 to vector<16x128xf32>
    %7 = arith.mulf %6, %5 : vector<16x128xf32>
    %8 = arith.maximumf %5, %7 : vector<16x128xf32>
    %c0_6 = arith.constant 0 : index
    %c0_7 = arith.constant 0 : index
    %9 = vector.load %arg3[%c0_6, %c0_7] : memref<128x2xf32, #tpu.memory_space<vmem>>, vector<128x2xf32>
    %cst_8 = arith.constant dense<0.000000e+00> : vector<16x2xf32>
    %10 = tpu.matmul %8, %9, %cst_8 {dimension_numbers = #tpu.dot_dimension_numbers<[1], [0], [0], [1], [0, 0, 1, 1], [], []>} : vector<16x128xf32>, vector<128x2xf32>, vector<16x2xf32> -> vector<16x2xf32>
    %11 = arith.mulf %8, %8 : vector<16x128xf32>
    %c0_9 = arith.constant 0 : index
    %c0_10 = arith.constant 0 : index
    %12 = vector.load %arg3[%c0_9, %c0_10] : memref<128x2xf32, #tpu.memory_space<vmem>>, vector<128x2xf32>
    %cst_11 = arith.constant dense<0.000000e+00> : vector<16x2xf32>
    %13 = tpu.matmul %11, %12, %cst_11 {dimension_numbers = #tpu.dot_dimension_numbers<[1], [0], [0], [1], [0, 0, 1, 1], [], []>} : vector<16x128xf32>, vector<128x2xf32>, vector<16x2xf32> -> vector<16x2xf32>
    %cst_12 = arith.constant 1.562500e-02 : f32
    %14 = vector.broadcast %cst_12 : f32 to vector<16x2xf32>
    %15 = arith.mulf %10, %14 : vector<16x2xf32>
    %cst_13 = arith.constant 1.562500e-02 : f32
    %16 = vector.broadcast %cst_13 : f32 to vector<16x2xf32>
    %17 = arith.mulf %13, %16 : vector<16x2xf32>
    %18 = arith.mulf %15, %15 : vector<16x2xf32>
    %19 = arith.subf %17, %18 : vector<16x2xf32>
    %cst_14 = arith.constant 0.000000e+00 : f32
    %20 = vector.broadcast %cst_14 : f32 to vector<16x2xf32>
    %21 = arith.maximumf %19, %20 : vector<16x2xf32>
    %22 = math.sqrt %21 : vector<16x2xf32>
    %cst_15 = arith.constant 9.99999974E-6 : f32
    %23 = vector.broadcast %cst_15 : f32 to vector<16x2xf32>
    %24 = arith.addf %21, %23 : vector<16x2xf32>
    %25 = math.rsqrt %24 : vector<16x2xf32>
    %c0_16 = arith.constant 0 : index
    %c0_17 = arith.constant 0 : index
    %26 = vector.load %arg4[%c0_16, %c0_17] : memref<2x128xf32, #tpu.memory_space<vmem>>, vector<2x128xf32>
    %cst_18 = arith.constant dense<0.000000e+00> : vector<16x128xf32>
    %27 = tpu.matmul %15, %26, %cst_18 {dimension_numbers = #tpu.dot_dimension_numbers<[1], [0], [0], [1], [0, 0, 1, 1], [], []>} : vector<16x2xf32>, vector<2x128xf32>, vector<16x128xf32> -> vector<16x128xf32>
    %c0_19 = arith.constant 0 : index
    %c0_20 = arith.constant 0 : index
    %28 = vector.load %arg4[%c0_19, %c0_20] : memref<2x128xf32, #tpu.memory_space<vmem>>, vector<2x128xf32>
    %cst_21 = arith.constant dense<0.000000e+00> : vector<16x128xf32>
    %29 = tpu.matmul %25, %28, %cst_21 {dimension_numbers = #tpu.dot_dimension_numbers<[1], [0], [0], [1], [0, 0, 1, 1], [], []>} : vector<16x2xf32>, vector<2x128xf32>, vector<16x128xf32> -> vector<16x128xf32>
    %30 = arith.subf %8, %27 : vector<16x128xf32>
    %31 = arith.mulf %30, %29 : vector<16x128xf32>
    %32 = arith.truncf %31 : vector<16x128xf32> to vector<16x128xbf16>
    %c0_22 = arith.constant 0 : index
    %c0_23 = arith.constant 0 : index
    %33 = vector.load %arg8[%c0_22, %c0_23] : memref<16x128xbf16, #tpu.memory_space<vmem>>, vector<16x128xbf16>
    tpu.vector_store %arg8[%c0_22, %c0_23], %32 {strides = array<i32>} : memref<16x128xbf16, #tpu.memory_space<vmem>>, vector<16x128xbf16>,
    %c0_24 = arith.constant 0 : index
    %c0_25 = arith.constant 0 : index
    %34 = vector.load %arg5[%c0_24, %c0_25] : memref<16x16xf32, #tpu.memory_space<vmem>>, vector<16x16xf32>
    %cst_26 = arith.constant dense<0.000000e+00> : vector<16x2xf32>
    %35 = tpu.matmul %34, %15, %cst_26 {dimension_numbers = #tpu.dot_dimension_numbers<[1], [0], [0], [1], [0, 0, 1, 1], [], []>} : vector<16x16xf32>, vector<16x2xf32>, vector<16x2xf32> -> vector<16x2xf32>
    %c0_27 = arith.constant 0 : index
    %c0_28 = arith.constant 0 : index
    %36 = vector.load %arg6[%c0_27, %c0_28] : memref<16x16xf32, #tpu.memory_space<vmem>>, vector<16x16xf32>
    %cst_29 = arith.constant dense<0.000000e+00> : vector<16x2xf32>
    %37 = tpu.matmul %36, %22, %cst_29 {dimension_numbers = #tpu.dot_dimension_numbers<[1], [0], [0], [1], [0, 0, 1, 1], [], []>} : vector<16x16xf32>, vector<16x2xf32>, vector<16x2xf32> -> vector<16x2xf32>
    %38 = arith.addf %35, %37 : vector<16x2xf32>
    %c0_30 = arith.constant 0 : index
    %c0_31 = arith.constant 0 : index
    %39 = vector.load %arg7[%c0_30, %c0_31] : memref<16x1xf32, #tpu.memory_space<vmem>>, vector<16x1xf32>
    %40 = vector.broadcast %39 : vector<16x1xf32> to vector<16x2xf32>
    %41 = arith.addf %38, %40 : vector<16x2xf32>
    %c0_32 = arith.constant 0 : index
    %c0_33 = arith.constant 0 : index
    %42 = vector.load %arg9[%c0_32, %c0_33] : memref<16x2xf32, #tpu.memory_space<vmem>>, vector<16x2xf32>
    tpu.vector_store %arg9[%c0_32, %c0_33], %41 {strides = array<i32>} : memref<16x2xf32, #tpu.memory_space<vmem>>, vector<16x2xf32>,
    return
  }
}

module attributes {stable_mosaic.version = 11 : i64} {
  func.func @_stage_kernel_batched(%arg0: memref<256x32xbf16, #tpu.memory_space<vmem>>, %arg1: memref<16x256xbf16, #tpu.memory_space<vmem>>, %arg2: memref<16x1xf32, #tpu.memory_space<vmem>>, %arg3: memref<32x2xf32, #tpu.memory_space<vmem>>, %arg4: memref<2x32xf32, #tpu.memory_space<vmem>>, %arg5: memref<16x16xf32, #tpu.memory_space<vmem>>, %arg6: memref<16x16xf32, #tpu.memory_space<vmem>>, %arg7: memref<16x1xf32, #tpu.memory_space<vmem>>, %arg8: memref<16x32xf32, #tpu.memory_space<vmem>>, %arg9: memref<16x2xf32, #tpu.memory_space<vmem>>) attributes {dimension_semantics = [], scalar_prefetch = 0 : i64, scratch_operands = 0 : i64, tpu.core_type = #tpu.core_type<tc>} {
    %c0 = arith.constant 0 : index
    %c0_0 = arith.constant 0 : index
    %0 = vector.load %arg1[%c0, %c0_0] : memref<16x256xbf16, #tpu.memory_space<vmem>>, vector<16x256xbf16>
    %c0_1 = arith.constant 0 : index
    %c0_2 = arith.constant 0 : index
    %1 = vector.load %arg0[%c0_1, %c0_2] : memref<256x32xbf16, #tpu.memory_space<vmem>>, vector<256x32xbf16>
    %cst = arith.constant dense<0.000000e+00> : vector<16x32xf32>
    %2 = tpu.matmul %0, %1, %cst {dimension_numbers = #tpu.dot_dimension_numbers<[1], [0], [0], [1], [0, 0, 1, 1], [], []>} : vector<16x256xbf16>, vector<256x32xbf16>, vector<16x32xf32> -> vector<16x32xf32>
    %c0_3 = arith.constant 0 : index
    %c0_4 = arith.constant 0 : index
    %3 = vector.load %arg2[%c0_3, %c0_4] : memref<16x1xf32, #tpu.memory_space<vmem>>, vector<16x1xf32>
    %4 = vector.broadcast %3 : vector<16x1xf32> to vector<16x32xf32>
    %5 = arith.addf %2, %4 : vector<16x32xf32>
    %cst_5 = arith.constant 2.000000e-01 : f32
    %6 = vector.broadcast %cst_5 : f32 to vector<16x32xf32>
    %7 = arith.mulf %6, %5 : vector<16x32xf32>
    %8 = arith.maximumf %5, %7 : vector<16x32xf32>
    %c0_6 = arith.constant 0 : index
    %c0_7 = arith.constant 0 : index
    %9 = vector.load %arg3[%c0_6, %c0_7] : memref<32x2xf32, #tpu.memory_space<vmem>>, vector<32x2xf32>
    %cst_8 = arith.constant dense<0.000000e+00> : vector<16x2xf32>
    %10 = tpu.matmul %8, %9, %cst_8 {dimension_numbers = #tpu.dot_dimension_numbers<[1], [0], [0], [1], [0, 0, 1, 1], [], []>} : vector<16x32xf32>, vector<32x2xf32>, vector<16x2xf32> -> vector<16x2xf32>
    %11 = arith.mulf %8, %8 : vector<16x32xf32>
    %c0_9 = arith.constant 0 : index
    %c0_10 = arith.constant 0 : index
    %12 = vector.load %arg3[%c0_9, %c0_10] : memref<32x2xf32, #tpu.memory_space<vmem>>, vector<32x2xf32>
    %cst_11 = arith.constant dense<0.000000e+00> : vector<16x2xf32>
    %13 = tpu.matmul %11, %12, %cst_11 {dimension_numbers = #tpu.dot_dimension_numbers<[1], [0], [0], [1], [0, 0, 1, 1], [], []>} : vector<16x32xf32>, vector<32x2xf32>, vector<16x2xf32> -> vector<16x2xf32>
    %cst_12 = arith.constant 6.250000e-02 : f32
    %14 = vector.broadcast %cst_12 : f32 to vector<16x2xf32>
    %15 = arith.mulf %10, %14 : vector<16x2xf32>
    %cst_13 = arith.constant 6.250000e-02 : f32
    %16 = vector.broadcast %cst_13 : f32 to vector<16x2xf32>
    %17 = arith.mulf %13, %16 : vector<16x2xf32>
    %18 = arith.mulf %15, %15 : vector<16x2xf32>
    %19 = arith.subf %17, %18 : vector<16x2xf32>
    %cst_14 = arith.constant 0.000000e+00 : f32
    %20 = vector.broadcast %cst_14 : f32 to vector<16x2xf32>
    %21 = arith.maximumf %19, %20 : vector<16x2xf32>
    %22 = math.sqrt %21 : vector<16x2xf32>
    %cst_15 = arith.constant 9.99999974E-6 : f32
    %23 = vector.broadcast %cst_15 : f32 to vector<16x2xf32>
    %24 = arith.addf %21, %23 : vector<16x2xf32>
    %25 = math.rsqrt %24 : vector<16x2xf32>
    %c0_16 = arith.constant 0 : index
    %c0_17 = arith.constant 0 : index
    %26 = vector.load %arg4[%c0_16, %c0_17] : memref<2x32xf32, #tpu.memory_space<vmem>>, vector<2x32xf32>
    %cst_18 = arith.constant dense<0.000000e+00> : vector<16x32xf32>
    %27 = tpu.matmul %15, %26, %cst_18 {dimension_numbers = #tpu.dot_dimension_numbers<[1], [0], [0], [1], [0, 0, 1, 1], [], []>} : vector<16x2xf32>, vector<2x32xf32>, vector<16x32xf32> -> vector<16x32xf32>
    %c0_19 = arith.constant 0 : index
    %c0_20 = arith.constant 0 : index
    %28 = vector.load %arg4[%c0_19, %c0_20] : memref<2x32xf32, #tpu.memory_space<vmem>>, vector<2x32xf32>
    %cst_21 = arith.constant dense<0.000000e+00> : vector<16x32xf32>
    %29 = tpu.matmul %25, %28, %cst_21 {dimension_numbers = #tpu.dot_dimension_numbers<[1], [0], [0], [1], [0, 0, 1, 1], [], []>} : vector<16x2xf32>, vector<2x32xf32>, vector<16x32xf32> -> vector<16x32xf32>
    %30 = arith.subf %8, %27 : vector<16x32xf32>
    %31 = arith.mulf %30, %29 : vector<16x32xf32>
    %c0_22 = arith.constant 0 : index
    %c0_23 = arith.constant 0 : index
    %32 = vector.load %arg8[%c0_22, %c0_23] : memref<16x32xf32, #tpu.memory_space<vmem>>, vector<16x32xf32>
    tpu.vector_store %arg8[%c0_22, %c0_23], %31 {strides = array<i32>} : memref<16x32xf32, #tpu.memory_space<vmem>>, vector<16x32xf32>,
    %c0_24 = arith.constant 0 : index
    %c0_25 = arith.constant 0 : index
    %33 = vector.load %arg5[%c0_24, %c0_25] : memref<16x16xf32, #tpu.memory_space<vmem>>, vector<16x16xf32>
    %cst_26 = arith.constant dense<0.000000e+00> : vector<16x2xf32>
    %34 = tpu.matmul %33, %15, %cst_26 {dimension_numbers = #tpu.dot_dimension_numbers<[1], [0], [0], [1], [0, 0, 1, 1], [], []>} : vector<16x16xf32>, vector<16x2xf32>, vector<16x2xf32> -> vector<16x2xf32>
    %c0_27 = arith.constant 0 : index
    %c0_28 = arith.constant 0 : index
    %35 = vector.load %arg6[%c0_27, %c0_28] : memref<16x16xf32, #tpu.memory_space<vmem>>, vector<16x16xf32>
    %cst_29 = arith.constant dense<0.000000e+00> : vector<16x2xf32>
    %36 = tpu.matmul %35, %22, %cst_29 {dimension_numbers = #tpu.dot_dimension_numbers<[1], [0], [0], [1], [0, 0, 1, 1], [], []>} : vector<16x16xf32>, vector<16x2xf32>, vector<16x2xf32> -> vector<16x2xf32>
    %37 = arith.addf %34, %36 : vector<16x2xf32>
    %c0_30 = arith.constant 0 : index
    %c0_31 = arith.constant 0 : index
    %38 = vector.load %arg7[%c0_30, %c0_31] : memref<16x1xf32, #tpu.memory_space<vmem>>, vector<16x1xf32>
    %39 = vector.broadcast %38 : vector<16x1xf32> to vector<16x2xf32>
    %40 = arith.addf %37, %39 : vector<16x2xf32>
    %c0_32 = arith.constant 0 : index
    %c0_33 = arith.constant 0 : index
    %41 = vector.load %arg9[%c0_32, %c0_33] : memref<16x2xf32, #tpu.memory_space<vmem>>, vector<16x2xf32>
    tpu.vector_store %arg9[%c0_32, %c0_33], %40 {strides = array<i32>} : memref<16x2xf32, #tpu.memory_space<vmem>>, vector<16x2xf32>,
    return
  }
}

</mosaic_0001>

<bundles_post_ra>
// kernel: _lambda_.6
= control target key start
LH: loop header
LB: loop body
LE: loop exit
PB: predicated region body
PF: predicated region fallthrough
CT: control target
= control target key end

     0   :  { %s1243_s24 = smov 0   ;;  %s1375_s0 = inlined_call_operand.vmem [shape: bf16[2,72,1024], index: 0, kind: input, shape index: {}]   ;;  %s1376_s1 = inlined_call_operand.vmem [shape: bf16[8,72], index: 1, kind: input, shape index: {}]   ;;  %s1377_s2 = inlined_call_operand.vmem [shape: f32[8,1], index: 2, kind: input, shape index: {}]   ;;  %s1378_s3 = inlined_call_operand.vmem [shape: f32[16,8], index: 3, kind: input, shape index: {}]   ;;  %s1379_s4 = inlined_call_operand.vmem [shape: f32[16,8], index: 4, kind: input, shape index: {}]   ;;  %s1380_s5 = inlined_call_operand.vmem [shape: f32[16,1], index: 5, kind: input, shape index: {}]   ;;  %s1381_s6 = inlined_call_operand.vmem [shape: bf16[2,8,1024], index: 6, kind: output, shape index: {0}]   ;;  %s1382_s7 = inlined_call_operand.vmem [shape: f32[2,16,1], index: 7, kind: output, shape index: {1}]  }
   0x1 LB: > { %s1079_s25 = sadd.s32 4294967295, %s1200_s24   ;;  %p1083_p0 = scmp.ge.s32.totalorder %s1200_s24, 1  ;;  %s1200_s24 = sphi %s1243_s24, %s18_s24  }
   0x2   : > { %p240_p1 = scmp.lt.s32.totalorder %s1200_s24, 3 }
   0x4   : > { %p241_p2 = pnand %p1083_p0, %p240_p1 }
   0x5   : > { %p277_p3 = scmp.lt.s32.totalorder (!%p241_p2), %s1079_s25, 1  ;;  %v1202_v0 = vmov (!%p241_p2), 0   ;;  %v330_v1 = vld [vmem:[%s1377_s2] sm:$0xff] (!%p241_p2)  ;;  %vm520_vm0 = vcmask (!%p241_p2), 1043456   ;;  %vm516_vm1 = vcmask (!%p241_p2), 588800   ;;  %vm821_vm2 = vcmask (!%p241_p2), 64512  }
   0x6   : > { %244 = sbr.rel (%p241_p2) target bundleno = 674 (0x2a2), region = 44  ;;  %577 = vmatprep.mubr.bf16.mxu0 (!%p241_p2), %v1202_v0  ;;  %618 = vmatprep.mubr.bf16.mxu1 (!%p241_p2), %v1202_v0  ;;  %v293_v52 = vld [vmem:[%s1376_s1] sm:$0xf] (!%p241_p2)  ;;  %vm988_vm5 = vcmask (!%p241_p2), 7168  }
   0x7   : > { %1181 = vset.pattern.permute.xlu0 (!%p241_p2), %v1202_v0 }
   0x8   : > { %333 = vperm.xlu0 (!%p241_p2), %1181, %v330_v1  }
   0xd   : > { %s1384_s25 = smov (!%p277_p3, %s1079_s25), 1 }
   0xe   : > { %s1171_s28 = smul.u32 288, %s1384_s25  ;;  %s1147_s17 = sshll.u32 %s1384_s25, 5 }
   0xf   : > { %s286_s20 = scalar_lea.vmem %s1381_s6, %s1147_s17  ;;  %s1148_s23 = sshll.u32 %s1384_s25, 4 }
  0x10   : > { %s1263_s8 = scalar_lea.vmem %s1375_s0, %s1171_s28  ;;  %s291_s9 = scalar_lea.vmem %s1382_s7, %s1148_s23 }
  0x11   : > { %v294_v2 = vld [vmem:[%s1263_s8] sm:$0xff]  ;;  %v295_v4 = vld [vmem:[%s1263_s8 + $0x8] sm:$0xff]  ;;  %v296_v40 = vld [vmem:[%s1263_s8 + $0x10] sm:$0xff] }
  0x12   : > { %v298_v3 = vld [vmem:[%s1263_s8 + $0x20] sm:$0xff]  ;;  %v299_v6 = vld [vmem:[%s1263_s8 + $0x28] sm:$0xff]  ;;  %v300_v41 = vld [vmem:[%s1263_s8 + $0x30] sm:$0xff] }
  0x13   : > { %v1090_v5 = vcombine.high %v294_v2, %v298_v3  ;;  %v1089_v7 = vcombine.low %v294_v2, %v298_v3  ;;  %v302_v8 = vld [vmem:[%s1263_s8 + $0x40] sm:$0xff]  ;;  %v1092_v10 = vcombine.high %v295_v4, %v299_v6  ;;  %v1091_v11 = vcombine.low %v295_v4, %v299_v6  ;;  %v303_v13 = vld [vmem:[%s1263_s8 + $0x48] sm:$0xff]  ;;  %v297_v42 = vld [vmem:[%s1263_s8 + $0x18] sm:$0xff] }
  0x14   : > { %v306_v9 = vld [vmem:[%s1263_s8 + $0x60] sm:$0xff]  ;;  %v307_v14 = vld [vmem:[%s1263_s8 + $0x68] sm:$0xff]  ;;  %v301_v43 = vld [vmem:[%s1263_s8 + $0x38] sm:$0xff]  ;;  %v1094_v45 = vcombine.high %v296_v40, %v300_v41  ;;  %v1093_v53 = vcombine.low %v296_v40, %v300_v41 }
  0x15   : > { %v1098_v12 = vcombine.high %v302_v8, %v306_v9  ;;  %v310_v15 = vld [vmem:[%s1263_s8 + $0x80] sm:$0xff]  ;;  %545 = vmatprep.subr.bf16.mxu0 %v1090_v5  ;;  %v1100_v16 = vcombine.high %v303_v13, %v307_v14  ;;  %v311_v18 = vld [vmem:[%s1263_s8 + $0x88] sm:$0xff]  ;;  %586 = vmatprep.subr.bf16.mxu1 %v1092_v10  ;;  %v1097_v20 = vcombine.low %v302_v8, %v306_v9  ;;  %v304_v48 = vld [vmem:[%s1263_s8 + $0x50] sm:$0xff] }
  0x16   : > { %v314_v17 = vld [vmem:[%s1263_s8 + $0xa0] sm:$0xff]  ;;  %v315_v19 = vld [vmem:[%s1263_s8 + $0xa8] sm:$0xff]  ;;  %546 = vmatpush1.bf16.msra.mxu0 %v1089_v7  ;;  %587 = vmatpush1.bf16.msra.mxu1 %v1091_v11  ;;  %v1099_v21 = vcombine.low %v303_v13, %v307_v14  ;;  %v1096_v47 = vcombine.high %v297_v42, %v301_v43  ;;  %v308_v49 = vld [vmem:[%s1263_s8 + $0x70] sm:$0xff]  ;;  %v1095_v54 = vcombine.low %v297_v42, %v301_v43 }
  0x17   : > { %547 = vmatprep.subr.bf16.mxu0 %v1098_v12  ;;  %v1106_v22 = vcombine.high %v310_v15, %v314_v17  ;;  %588 = vmatprep.subr.bf16.mxu1 %v1100_v16  ;;  %v1108_v23 = vcombine.high %v311_v18, %v315_v19  ;;  %v318_v24 = vld [vmem:[%s1263_s8 + $0xc0] sm:$0xff]  ;;  %v319_v26 = vld [vmem:[%s1263_s8 + $0xc8] sm:$0xff]  ;;  %v1105_v28 = vcombine.low %v310_v15, %v314_v17  ;;  %v305_v50 = vld [vmem:[%s1263_s8 + $0x58] sm:$0xff] }
  0x18   : > { %v322_v25 = vld [vmem:[%s1263_s8 + $0xe0] sm:$0xff]  ;;  %v323_v27 = vld [vmem:[%s1263_s8 + $0xe8] sm:$0xff]  ;;  %v1107_v29 = vcombine.low %v311_v18, %v315_v19  ;;  %v309_v51 = vld [vmem:[%s1263_s8 + $0x78] sm:$0xff]  ;;  %v1102_v55 = vcombine.high %v304_v48, %v308_v49  ;;  %v1101_v61 = vcombine.low %v304_v48, %v308_v49 }
  0x19   : > { %v1114_v30 = vcombine.high %v318_v24, %v322_v25  ;;  %v1116_v31 = vcombine.high %v319_v26, %v323_v27  ;;  %v326_v32 = vld [vmem:[%s1263_s8 + $0x100] sm:$0xff]  ;;  %v327_v33 = vld [vmem:[%s1263_s8 + $0x108] sm:$0xff]  ;;  %v1113_v34 = vcombine.low %v318_v24, %v322_v25  ;;  %v1115_v35 = vcombine.low %v319_v26, %v323_v27  ;;  %v312_v57 = vld [vmem:[%s1263_s8 + $0x90] sm:$0xff] }
  0x1a   : > { %548 = vmatpush1.bf16.msra.mxu0 %v1097_v20  ;;  %589 = vmatpush1.bf16.msra.mxu1 %v1099_v21  ;;  %v1122_v36 = vcombine.high %v326_v32, %v326_v32  ;;  %v1121_v37 = vcombine.low %v326_v32, %v326_v32  ;;  %v1124_v38 = vcombine.high %v327_v33, %v327_v33  ;;  %v316_v58 = vld [vmem:[%s1263_s8 + $0xb0] sm:$0xff]  ;;  %v313_v59 = vld [vmem:[%s1263_s8 + $0x98] sm:$0xff] }
  0x1b   : > { %549 = vmatprep.subr.bf16.mxu0 %v1106_v22  ;;  %590 = vmatprep.subr.bf16.mxu1 %v1108_v23  ;;  %v1123_v39 = vcombine.low %v327_v33, %v327_v33  ;;  %v1104_v56 = vcombine.high %v305_v50, %v309_v51  ;;  %v317_v60 = vld [vmem:[%s1263_s8 + $0xb8] sm:$0xff]  ;;  %v1103_v62 = vcombine.low %v305_v50, %v309_v51  ;;  %v320_v2 = vld [vmem:[%s1263_s8 + $0xd0] sm:$0xff] }
  0x1c   : > { %v522_v44 = vsel %vm520_vm0, %v1121_v37, 0  ;;  %v1110_v63 = vcombine.high %v312_v57, %v316_v58  ;;  %v1112_v1 = vcombine.high %v313_v59, %v317_v60  ;;  %v324_v3 = vld [vmem:[%s1263_s8 + $0xf0] sm:$0xff]  ;;  %v321_v4 = vld [vmem:[%s1263_s8 + $0xd8] sm:$0xff]  ;;  %v1109_v6 = vcombine.low %v312_v57, %v316_v58 }
  0x1d   : > { %v528_v46 = vsel %vm520_vm0, %v1123_v39, 0  ;;  %v325_v5 = vld [vmem:[%s1263_s8 + $0xf8] sm:$0xff]  ;;  %v1111_v7 = vcombine.low %v313_v59, %v317_v60  ;;  %v1118_v8 = vcombine.high %v320_v2, %v324_v3  ;;  %v328_v10 = vld [vmem:[%s1263_s8 + $0x110] sm:$0xff]  ;;  %v1117_v12 = vcombine.low %v320_v2, %v324_v3 }
  0x1e   : > { %550 = vmatpush1.bf16.msra.mxu0 %v1105_v28  ;;  %591 = vmatpush1.bf16.msra.mxu1 %v1107_v29  ;;  %v1120_v9 = vcombine.high %v321_v4, %v325_v5  ;;  %v329_v11 = vld [vmem:[%s1263_s8 + $0x118] sm:$0xff]  ;;  %v1119_v13 = vcombine.low %v321_v4, %v325_v5  ;;  %v1126_v14 = vcombine.high %v328_v10, %v328_v10 }
  0x1f   : > { %551 = vmatprep.subr.bf16.mxu0 %v1114_v30  ;;  %592 = vmatprep.subr.bf16.mxu1 %v1116_v31  ;;  %v1125_v15 = vcombine.low %v328_v10, %v328_v10  ;;  %v1128_v16 = vcombine.high %v329_v11, %v329_v11 }
  0x21   : > { %v534_v17 = vsel %vm520_vm0, %v1125_v15, 0 }
  0x22   : > { %552 = vmatpush1.bf16.msra.mxu0 %v1113_v34  ;;  %593 = vmatpush1.bf16.msra.mxu1 %v1115_v35 }
  0x23   : > { %1129 = vmatprep.subr.msk.bf16.mxu0 %vm520_vm0, %v1122_v36  ;;  %1131 = vmatprep.subr.msk.bf16.mxu1 %vm520_vm0, %v1124_v38 }
  0x26   : > { %554 = vmatpush1.bf16.msra.mxu0 %v522_v44  ;;  %595 = vmatpush1.bf16.msra.mxu1 %v528_v46 }
  0x27   : > { %627 = vmatprep.subr.bf16.mxu0 %v1094_v45  ;;  %668 = vmatprep.subr.bf16.mxu1 %v1096_v47 }
  0x29   : > { %1130 = vmatmul.mubr.msk.bf16.vlgmr.msra.gmra.mrb[0].mxu0 %vm516_vm1, %v293_v52  ;;  %1132 = vmatmul.mubr.msk.bf16.vlgmr.msra.gmra.mrb[0].mxu1 %vm516_vm1, %v293_v52 }
  0x2a   : > { %628 = vmatpush1.bf16.msra.mxu0 %v1093_v53  ;;  %669 = vmatpush1.bf16.msra.mxu1 %v1095_v54 }
  0x2b   : > { %629 = vmatprep.subr.bf16.mxu0 %v1102_v55  ;;  %670 = vmatprep.subr.bf16.mxu1 %v1104_v56 }
  0x2c   : > { %659 = vmatprep.mubr.bf16.mxu0 %v1202_v0  ;;  %700 = vmatprep.mubr.bf16.mxu1 %v1202_v0  ;;  %v1127_v0 = vcombine.low %v329_v11, %v329_v11 }
  0x2e   : > { %630 = vmatpush1.bf16.msra.mxu0 %v1101_v61  ;;  %671 = vmatpush1.bf16.msra.mxu1 %v1103_v62  ;;  %v540_v18 = vsel %vm520_vm0, %v1127_v0, 0 }
  0x2f   : > { %631 = vmatprep.subr.bf16.mxu0 %v1110_v63  ;;  %672 = vmatprep.subr.bf16.mxu1 %v1112_v1 }
  0x32   : > { %632 = vmatpush1.bf16.msra.mxu0 %v1109_v6  ;;  %673 = vmatpush1.bf16.msra.mxu1 %v1111_v7 }
  0x33   : > { %633 = vmatprep.subr.bf16.mxu0 %v1118_v8  ;;  %674 = vmatprep.subr.bf16.mxu1 %v1120_v9 }
  0x36   : > { %634 = vmatpush1.bf16.msra.mxu0 %v1117_v12  ;;  %675 = vmatpush1.bf16.msra.mxu1 %v1119_v13 }
  0x37   : > { %1133 = vmatprep.subr.msk.bf16.mxu0 %vm520_vm0, %v1126_v14  ;;  %1135 = vmatprep.subr.msk.bf16.mxu1 %vm520_vm0, %v1128_v16 }
  0x3a   : > { %636 = vmatpush1.bf16.msra.mxu0 %v534_v17  ;;  %677 = vmatpush1.bf16.msra.mxu1 %v540_v18  ;;  %v817_v18 = vld [vmem:[%s1378_s3] sm:$0xff] }
  0x3d   : > { %1134 = vmatmul.mubr.msk.bf16.vlgmr.msra.gmra.mrb[4].mxu0 %vm516_vm1, %v293_v52  ;;  %1136 = vmatmul.mubr.msk.bf16.vlgmr.msra.gmra.mrb[4].mxu1 %vm516_vm1, %v293_v52 }
  0x3e   : > { %1166 = vmatprep.mubr.msk.f32.mxu0 %vm821_vm2, %v817_v18 }
  0x87   : > { %v334_v19 = vpop.permute.xlu0 %333 }
  0xfc   : > { %v579_v20 = vpop.f32.mrb[0].mxu0  ;;  %v620_v22 = vpop.f32.mrb[0].mxu1 }
  0xfd   : > { %v581_v21 = vpop.f32.mrb[1].mxu0  ;;  %v622_v24 = vpop.f32.mrb[1].mxu1  ;;  %v580_v25 = vadd.f32 %v579_v20, %v334_v19  ;;  %v621_v32 = vadd.f32 %v620_v22, %v334_v19 }
  0xfe   : > { %v583_v23 = vpop.f32.mrb[2].mxu0  ;;  %v582_v26 = vadd.f32 %v581_v21, %v334_v19  ;;  %v624_v28 = vpop.f32.mrb[2].mxu1  ;;  %v623_v36 = vadd.f32 %v622_v24, %v334_v19 }
  0xff   : > { %v584_v27 = vpop.f32.mrb[3].mxu0  ;;  %v625_v29 = vpop.f32.mrb[3].mxu1  ;;  %v709_v30 = vmul.f32 0.2, %v580_v25  ;;  %v711_v35 = vmul.f32 0.2, %v621_v32 }
 0x100   : > { %v710_v31 = vmul.f32 0.2, %v582_v26  ;;  %v712_v41 = vmul.f32 0.2, %v623_v36  ;;  %v818_v23 = vld [vmem:[%s1378_s3 + $0x8] sm:$0xff] }
 0x101   : > { %v1318_v33 = vmax.f32 %v580_v25, %v709_v30  ;;  %v1326_v39 = vmax.f32 %v621_v32, %v711_v35 }
 0x102   : > { %v1320_v34 = vmax.f32 %v582_v26, %v710_v31  ;;  %v1333_v46 = vmax.f32 %v623_v36, %v712_v41 }
 0x103   : > { %v734_v37 = vmul.f32 %v1318_v33, %v1318_v33  ;;  %v736_v43 = vmul.f32 %v1326_v39, %v1326_v39 }
 0x104   : > { %v735_v38 = vmul.f32 %v1320_v34, %v1320_v34  ;;  %v725_v40 = vadd.f32 %v1320_v34, %v1318_v33  ;;  %v737_v63 = vmul.f32 %v1333_v46, %v1333_v46 }
 0x106   : > { %v742_v42 = vadd.f32 %v735_v38, %v734_v37  ;;  %v726_v45 = vadd.f32 %v725_v40, %v1326_v39 }
 0x108   : > { %v743_v54 = vadd.f32 %v742_v42, %v736_v43  ;;  %v727_v62 = vadd.f32 %v726_v45, %v1333_v46 }
 0x10a   : > { %v744_v7 = vadd.f32 %v743_v54, %v737_v63 }
 0x110   : > { %v661_v44 = vpop.f32.mrb[4].mxu0  ;;  %v702_v48 = vpop.f32.mrb[4].mxu1 }
 0x111   : > { %v662_v47 = vadd.f32 %v661_v44, %v334_v19  ;;  %v663_v49 = vpop.f32.mrb[5].mxu0  ;;  %v703_v50 = vadd.f32 %v702_v48, %v334_v19  ;;  %v704_v52 = vpop.f32.mrb[5].mxu1 }
 0x112   : > { %v664_v51 = vadd.f32 %v663_v49, %v334_v19  ;;  %v665_v53 = vpop.f32.mrb[6].mxu0  ;;  %v705_v56 = vadd.f32 %v704_v52, %v334_v19  ;;  %v706_v58 = vpop.f32.mrb[6].mxu1  ;;  %v819_v19 = vld [vmem:[%s1379_s4] sm:$0xff] }
 0x113   : > { %v713_v55 = vmul.f32 0.2, %v662_v47  ;;  %v666_v57 = vpop.f32.mrb[7].mxu0  ;;  %v715_v59 = vmul.f32 0.2, %v703_v50  ;;  %v707_v61 = vpop.f32.mrb[7].mxu1  ;;  %1161 = vmatprep.mubr.msk.f32.mxu1 %vm821_vm2, %v819_v19 }
 0x114   : > { %v714_v60 = vmul.f32 0.2, %v664_v51  ;;  %v716_v2 = vmul.f32 0.2, %v705_v56 }
 0x115   : > { %v721_v1 = vmax.f32 %v662_v47, %v713_v55  ;;  %v723_v6 = vmax.f32 %v703_v50, %v715_v59  ;;  %v820_v55 = vld [vmem:[%s1379_s4 + $0x8] sm:$0xff] }
 0x116   : > { %v722_v3 = vmax.f32 %v664_v51, %v714_v60  ;;  %v724_v9 = vmax.f32 %v705_v56, %v716_v2  ;;  %v985_v59 = vld [vmem:[%s1380_s5 + $0x8] sm:$0xff] }
 0x117   : > { %v728_v4 = vadd.f32 %v727_v62, %v721_v1  ;;  %v738_v5 = vmul.f32 %v721_v1, %v721_v1  ;;  %v740_v13 = vmul.f32 %v723_v6, %v723_v6  ;;  %v984_v62 = vld [vmem:[%s1380_s5] sm:$0xff] }
 0x118   : > { %v739_v8 = vmul.f32 %v722_v3, %v722_v3  ;;  %v741_v16 = vmul.f32 %v724_v9, %v724_v9 }
 0x119   : > { %v729_v10 = vadd.f32 %v728_v4, %v722_v3  ;;  %v745_v11 = vadd.f32 %v744_v7, %v738_v5 }
 0x11b   : > { %v730_v12 = vadd.f32 %v729_v10, %v723_v6  ;;  %v746_v14 = vadd.f32 %v745_v11, %v739_v8 }
 0x11d   : > { %v731_v15 = vadd.f32 %v730_v12, %v724_v9  ;;  %v747_v0 = vadd.f32 %v746_v14, %v740_v13 }
 0x11f   : > { %732 = vadd.xlane.f32.xlu0 %v731_v15  ;;  %v748_v17 = vadd.f32 %v747_v0, %v741_v16 }
 0x121   : > { %749 = vadd.xlane.f32.xlu1 %v748_v17 }
 0x1ac   : > { %v733_v20 = vpop.xlane.xlu0 %732 }
 0x1ad   : > { %v751_v21 = vmul.f32 0.0009765625, %v733_v20 }
 0x1ae   : > { %v750_v22 = vpop.xlane.xlu1 %749 }
 0x1af   : > { %1164 = vmatprep.subr.mxu0 %v751_v21  ;;  %v752_v24 = vmul.f32 0.0009765625, %v750_v22  ;;  %v753_v25 = vmul.f32 %v751_v21, %v751_v21  ;;  %v765_v30 = vsub.f32 %v1318_v33, %v751_v21  ;;  %v766_v31 = vsub.f32 %v1320_v34, %v751_v21 }
 0x1b0   : > { %1165 = vmatpush3.msra.mxu0 %v751_v21  ;;  %v767_v32 = vsub.f32 %v1326_v39, %v751_v21  ;;  %v768_v35 = vsub.f32 %v1333_v46, %v751_v21  ;;  %v769_v36 = vsub.f32 %v721_v1, %v751_v21  ;;  %v770_v37 = vsub.f32 %v722_v3, %v751_v21 }
 0x1b1   : > { %1167 = vmatmul.mubr.msk.f32.vlgmr.msra.gmra.mrb[8].mxu0 %vm821_vm2, %v818_v23  ;;  %v754_v26 = vsub.f32 %v752_v24, %v753_v25  ;;  %v771_v41 = vsub.f32 %v723_v6, %v751_v21  ;;  %v772_v42 = vsub.f32 %v724_v9, %v751_v21 }
 0x1b3   : > { %v755_v27 = vmax.f32 %v754_v26, 0.0 }
 0x1b5   : > { %v763_v28 = vadd.f32 1e-05, %v755_v27  ;;  %1190 = vrsqrt.f32 %v755_v27  ;;  %vm758_vm3 = vcmp.eq.f32.partialorder %v755_v27, inf  ;;  %v761_v43 = vand.u32 2147483648, %v755_v27 }
 0x1b6   : > { %vm760_vm4 = vcmp.eq.f32.partialorder %v755_v27, 0.0 }
 0x1b7   : > { %1192 = vrsqrt.f32 %v763_v28 }
 0x1bf   : > { %v1191_v29 = vpop.eup %1190 }
 0x1c0   : > { %v757_v38 = vmul.f32 %v1191_v29, %v755_v27 }
 0x1c1   : > { %v1193_v40 = vpop.eup %1192 }
 0x1c2   : > { %v773_v44 = vmul.f32 %v1193_v40, %v765_v30  ;;  %v774_v45 = vmul.f32 %v1193_v40, %v766_v31  ;;  %v775_v47 = vmul.f32 %v1193_v40, %v767_v32  ;;  %v776_v48 = vmul.f32 %v1193_v40, %v768_v35 }
 0x1c3   : > { %v777_v33 = vmul.f32 %v1193_v40, %v769_v36  ;;  %v778_v34 = vmul.f32 %v1193_v40, %v770_v37  ;;  %v779_v39 = vmul.f32 %v1193_v40, %v771_v41  ;;  %v780_v46 = vmul.f32 %v1193_v40, %v772_v42 }
 0x1c4   : > { %v1149_v49 = vpack.c.bf16 %v774_v45, %v773_v44  ;;  %v1150_v50 = vpack.c.bf16 %v776_v48, %v775_v47  ;;  %v759_v51 = vsel %vm758_vm3, %v755_v27, %v757_v38 }
 0x1c5   : > { %v1151_v52 = vpack.c.bf16 %v778_v34, %v777_v33  ;;  %v1152_v53 = vpack.c.bf16 %v780_v46, %v779_v39  ;;  %v762_v54 = vsel %vm760_vm4, %v761_v43, %v759_v51 }
 0x1c6   : > { %813 = vst [vmem:[%s286_s20] sm:$0xff] %v1149_v49  ;;  %814 = vst [vmem:[%s286_s20 + $0x8] sm:$0xff] %v1150_v50  ;;  %1159 = vmatprep.subr.mxu1 %v762_v54 }
 0x1c7   : > { %815 = vst [vmem:[%s286_s20 + $0x10] sm:$0xff] %v1151_v52  ;;  %816 = vst [vmem:[%s286_s20 + $0x18] sm:$0xff] %v1152_v53  ;;  %1160 = vmatpush3.msra.mxu1 %v762_v54 }
 0x1c8   : > { %1162 = vmatmul.mubr.msk.f32.vlgmr.msra.gmra.mrb[8].mxu1 %vm821_vm2, %v820_v55 }
 0x284   : > { %v1168_v56 = vpop.f32.mrb[8].mxu0 }
 0x285   : > { %v975_v57 = vpop.f32.mrb[9].mxu0 }
 0x29b   : > { %v1163_v58 = vpop.f32.mrb[8].mxu1 }
 0x29c   : > { %v981_v60 = vadd.f32 %v1168_v56, %v1163_v58  ;;  %v894_v61 = vpop.f32.mrb[9].mxu1 }
 0x29d   : > { %v976_v63 = vadd.f32 %v975_v57, %v894_v61 }
 0x29e   : > { %v987_v1 = vadd.f32 %v985_v59, %v981_v60 }
 0x29f   : > { %v986_v2 = vadd.f32 %v984_v62, %v976_v63 }
 0x2a0   : > { %990 = vst.msk [vmem:[%s291_s9 + $0x8] sm:$0xff] %vm988_vm5, %v987_v1 }
 0x2a1   : > { %989 = vst.msk [vmem:[%s291_s9] sm:$0xff] %vm988_vm5, %v986_v2 }
 0x2a2 PF: > { %s18_s24 = sadd.s32 1, %s1200_s24  }
 0x2a3   : > { %p15_p4 = scmp.ge.s32.totalorder %s18_s24, 4  }
 0x2a5   :  { %17 = sbr.rel (!%p15_p4) target bundleno = 1 (0x1), region = 86 }

// kernel: _lambda_.7
= control target key start
LH: loop header
LB: loop body
LE: loop exit
PB: predicated region body
PF: predicated region fallthrough
CT: control target
= control target key end

     0   :  { %s953_s24 = smov 0   ;;  %s1042_s0 = inlined_call_operand.vmem [shape: bf16[2,128,256], index: 0, kind: input, shape index: {}]   ;;  %s1043_s1 = inlined_call_operand.vmem [shape: bf16[16,128], index: 1, kind: input, shape index: {}]   ;;  %s1044_s2 = inlined_call_operand.vmem [shape: f32[16,1], index: 2, kind: input, shape index: {}, may-alias: {2,5}]   ;;  %s1045_s3 = inlined_call_operand.vmem [shape: f32[16,16], index: 3, kind: input, shape index: {}]   ;;  %s1046_s4 = inlined_call_operand.vmem [shape: f32[16,16], index: 4, kind: input, shape index: {}]   ;;  %s1047_s5 = inlined_call_operand.vmem [shape: f32[16,1], index: 5, kind: input, shape index: {}, may-alias: {2,5}]   ;;  %s1048_s6 = inlined_call_operand.vmem [shape: bf16[2,16,256], index: 6, kind: output, shape index: {0}]   ;;  %s1049_s7 = inlined_call_operand.vmem [shape: f32[2,16,1], index: 7, kind: output, shape index: {1}]  }
   0x1 LB: > { %s788_s25 = sadd.s32 4294967295, %s910_s24   ;;  %p792_p0 = scmp.ge.s32.totalorder %s910_s24, 1  ;;  %s910_s24 = sphi %s953_s24, %s18_s24  }
   0x2   : > { %p240_p1 = scmp.lt.s32.totalorder %s910_s24, 3 }
   0x4   : > { %p241_p2 = pnand %p792_p0, %p240_p1 }
   0x5   : > { %p277_p3 = scmp.lt.s32.totalorder (!%p241_p2), %s788_s25, 1  ;;  %v912_v0 = vmov (!%p241_p2), 0   ;;  %v311_v1 = vld [vmem:[%s1044_s2] sm:$0xff] (!%p241_p2)  ;;  %v312_v2 = vld [vmem:[%s1044_s2 + $0x8] sm:$0xff] (!%p241_p2)  ;;  %vm530_vm0 = vcmask (!%p241_p2), 130048   ;;  %vm697_vm5 = vcmask (!%p241_p2), 7168  }
   0x6   : > { %244 = sbr.rel (%p241_p2) target bundleno = 671 (0x29f), region = 44  ;;  %441 = vmatprep.mubr.bf16.mxu0 (!%p241_p2), %v912_v0  ;;  %870 = vset.pattern.permute.xlu0 (!%p241_p2), %v912_v0  ;;  %v895_v19 = vld [vmem:[%s1043_s1] sm:$0xff] (!%p241_p2)  }
   0x7   : > { %315 = vperm.xlu0 (!%p241_p2), %870, %v311_v1   ;;  %v528_v46 = vld [vmem:[%s1046_s4] sm:$0xff] (!%p241_p2) }
   0x8   : > { %841 = vmatprep.mubr.msk.f32.mxu1 (!%p241_p2), %vm530_vm0, %v528_v46 }
   0xb   : > { %320 = vperm.xlu0 (!%p241_p2), %870, %v312_v2  }
   0xd   : > { %s1051_s25 = smov (!%p277_p3, %s788_s25), 1 }
   0xe   : > { %s824_s30 = sshll.u32 %s1051_s25, 7  ;;  %s825_s15 = sshll.u32 %s1051_s25, 4 }
   0xf   : > { %s973_s10 = scalar_lea.vmem %s1042_s0, %s824_s30  ;;  %s286_s18 = scalar_lea.vmem %s1048_s6, %s825_s15 }
  0x10   : > { %v871_v3 = vld [vmem:[%s973_s10 + $0x4] ss:$8 sps:$4 sm:$0xff]   ;;  %v873_v4 = vld [vmem:[%s973_s10] ss:$8 sps:$4 sm:$0xff]   ;;  %v874_v5 = vld [vmem:[%s973_s10 + $0x14] ss:$8 sps:$4 sm:$0xff]  }
  0x11   : > { %409 = vmatprep.subr.bf16.mxu0 %v871_v3  ;;  %v876_v6 = vld [vmem:[%s973_s10 + $0x10] ss:$8 sps:$4 sm:$0xff]   ;;  %v877_v7 = vld [vmem:[%s973_s10 + $0x24] ss:$8 sps:$4 sm:$0xff]   ;;  %v879_v8 = vld [vmem:[%s973_s10 + $0x20] ss:$8 sps:$4 sm:$0xff]  }
  0x12   : > { %410 = vmatpush1.bf16.msra.mxu0 %v873_v4  ;;  %v880_v9 = vld [vmem:[%s973_s10 + $0x34] ss:$8 sps:$4 sm:$0xff]   ;;  %v882_v10 = vld [vmem:[%s973_s10 + $0x30] ss:$8 sps:$4 sm:$0xff]   ;;  %v883_v11 = vld [vmem:[%s973_s10 + $0x44] ss:$8 sps:$4 sm:$0xff]  }
  0x13   : > { %411 = vmatprep.subr.bf16.mxu0 %v874_v5  ;;  %v885_v12 = vld [vmem:[%s973_s10 + $0x40] ss:$8 sps:$4 sm:$0xff]   ;;  %v886_v13 = vld [vmem:[%s973_s10 + $0x54] ss:$8 sps:$4 sm:$0xff]   ;;  %v888_v14 = vld [vmem:[%s973_s10 + $0x50] ss:$8 sps:$4 sm:$0xff]  }
  0x14   : > { %v889_v15 = vld [vmem:[%s973_s10 + $0x64] ss:$8 sps:$4 sm:$0xff]   ;;  %v891_v16 = vld [vmem:[%s973_s10 + $0x60] ss:$8 sps:$4 sm:$0xff]   ;;  %v892_v17 = vld [vmem:[%s973_s10 + $0x74] ss:$8 sps:$4 sm:$0xff]  }
  0x15   : > { %v894_v18 = vld [vmem:[%s973_s10 + $0x70] ss:$8 sps:$4 sm:$0xff]   ;;  %s291_s10 = scalar_lea.vmem %s1049_s7, %s825_s15 }
  0x16   : > { %412 = vmatpush1.bf16.msra.mxu0 %v876_v6 }
  0x17   : > { %413 = vmatprep.subr.bf16.mxu0 %v877_v7 }
  0x1a   : > { %414 = vmatpush1.bf16.msra.mxu0 %v879_v8 }
  0x1b   : > { %415 = vmatprep.subr.bf16.mxu0 %v880_v9 }
  0x1e   : > { %416 = vmatpush1.bf16.msra.mxu0 %v882_v10 }
  0x1f   : > { %417 = vmatprep.subr.bf16.mxu0 %v883_v11 }
  0x22   : > { %418 = vmatpush1.bf16.msra.mxu0 %v885_v12 }
  0x23   : > { %419 = vmatprep.subr.bf16.mxu0 %v886_v13 }
  0x26   : > { %420 = vmatpush1.bf16.msra.mxu0 %v888_v14 }
  0x27   : > { %421 = vmatprep.subr.bf16.mxu0 %v889_v15 }
  0x2a   : > { %422 = vmatpush1.bf16.msra.mxu0 %v891_v16 }
  0x2b   : > { %423 = vmatprep.subr.bf16.mxu0 %v892_v17 }
  0x2e   : > { %424 = vmatpush1.bf16.msra.mxu0 %v894_v18 }
  0x31   : > { %442 = vmatmul.mubr.bf16.vlgmr.msra.gmra.mrb[0].mxu0 %v895_v19 }
  0x86   : > { %v316_v20 = vpop.permute.xlu0 %315 }
  0x8a   : > { %v321_v22 = vpop.permute.xlu0 %320 }
 0x104   : > { %v443_v21 = vpop.f32.mrb[0].mxu0 }
 0x105   : > { %v444_v23 = vadd.f32 %v443_v21, %v316_v20  ;;  %v445_v24 = vpop.f32.mrb[1].mxu0 }
 0x106   : > { %v446_v25 = vadd.f32 %v445_v24, %v316_v20  ;;  %v447_v26 = vpop.f32.mrb[2].mxu0  ;;  %v526_v24 = vld [vmem:[%s1045_s3] sm:$0xff] }
 0x107   : > { %v452_v27 = vmul.f32 0.2, %v444_v23  ;;  %v448_v28 = vadd.f32 %v447_v26, %v321_v22  ;;  %v449_v29 = vpop.f32.mrb[3].mxu0  ;;  %v694_v26 = vld [vmem:[%s1047_s5 + $0x8] sm:$0xff] }
 0x108   : > { %v453_v30 = vmul.f32 0.2, %v446_v25  ;;  %v450_v31 = vadd.f32 %v449_v29, %v321_v22 }
 0x109   : > { %v456_v32 = vmax.f32 %v444_v23, %v452_v27  ;;  %v454_v33 = vmul.f32 0.2, %v448_v28  ;;  %v529_v23 = vld [vmem:[%s1046_s4 + $0x8] sm:$0xff]  ;;  %v693_v27 = vld [vmem:[%s1047_s5] sm:$0xff] }
 0x10a   : > { %v457_v34 = vmax.f32 %v446_v25, %v453_v30  ;;  %v455_v35 = vmul.f32 0.2, %v450_v31  ;;  %v527_v25 = vld [vmem:[%s1045_s3 + $0x8] sm:$0xff] }
 0x10b   : > { %v466_v36 = vmul.f32 %v456_v32, %v456_v32  ;;  %v994_v37 = vmax.f32 %v448_v28, %v454_v33 }
 0x10c   : > { %v996_v38 = vmax.f32 %v450_v31, %v455_v35  ;;  %v460_v39 = vadd.f32 %v457_v34, %v456_v32  ;;  %v467_v40 = vmul.f32 %v457_v34, %v457_v34 }
 0x10d   : > { %v468_v43 = vmul.f32 %v994_v37, %v994_v37 }
 0x10e   : > { %461 = vadd.xlane.f32.xlu1 %v460_v39  ;;  %v470_v41 = vadd.f32 %v467_v40, %v466_v36  ;;  %v463_v42 = vadd.f32 %v996_v38, %v994_v37  ;;  %v469_v44 = vmul.f32 %v996_v38, %v996_v38 }
 0x110   : > { %471 = vadd.xlane.f32.xlu0 %v470_v41  ;;  %v473_v45 = vadd.f32 %v469_v44, %v468_v43 }
 0x112   : > { %464 = vadd.xlane.f32.xlu1 %v463_v42 }
 0x116   : > { %474 = vadd.xlane.f32.xlu1 %v473_v45 }
 0x19b   : > { %v462_v47 = vpop.xlane.xlu1 %461 }
 0x19c   : > { %v476_v48 = vmul.f32 0.00390625, %v462_v47 }
 0x19d   : > { %v472_v49 = vpop.xlane.xlu0 %471 }
 0x19e   : > { %v478_v50 = vmul.f32 0.00390625, %v472_v49  ;;  %v480_v51 = vmul.f32 %v476_v48, %v476_v48  ;;  %v504_v0 = vsub.f32 %v456_v32, %v476_v48  ;;  %v505_v1 = vsub.f32 %v457_v34, %v476_v48 }
 0x19f   : > { %v465_v52 = vpop.xlane.xlu1 %464 }
 0x1a0   : > { %v482_v53 = vsub.f32 %v478_v50, %v480_v51  ;;  %v477_v54 = vmul.f32 0.00390625, %v465_v52 }
 0x1a2   : > { %v484_v55 = vmax.f32 %v482_v53, 0.0  ;;  %v481_v57 = vmul.f32 %v477_v54, %v477_v54  ;;  %v506_v8 = vsub.f32 %v994_v37, %v477_v54  ;;  %v507_v11 = vsub.f32 %v996_v38, %v477_v54 }
 0x1a3   : > { %v475_v56 = vpop.xlane.xlu1 %474  ;;  %v855_v22 = vpack.c.bf16 %v477_v54, %v476_v48 }
 0x1a4   : > { %v479_v58 = vmul.f32 0.00390625, %v475_v56  ;;  %896 = vrsqrt.f32 %v484_v55  ;;  %v500_v59 = vadd.f32 1e-05, %v484_v55  ;;  %vm488_vm1 = vcmp.eq.f32.partialorder %v484_v55, inf }
 0x1a5   : > { %v491_v12 = vand.u32 2147483648, %v484_v55  ;;  %vm490_vm3 = vcmp.eq.f32.partialorder %v484_v55, 0.0 }
 0x1a6   : > { %v483_v60 = vsub.f32 %v479_v58, %v481_v57  ;;  %898 = vrsqrt.f32 %v500_v59 }
 0x1a8   : > { %v485_v61 = vmax.f32 %v483_v60, 0.0 }
 0x1aa   : > { %900 = vrsqrt.f32 %v485_v61  ;;  %v501_v62 = vadd.f32 1e-05, %v485_v61  ;;  %vm495_vm2 = vcmp.eq.f32.partialorder %v485_v61, inf  ;;  %v498_v13 = vand.u32 2147483648, %v485_v61 }
 0x1ab   : > { %vm497_vm4 = vcmp.eq.f32.partialorder %v485_v61, 0.0 }
 0x1ac   : > { %902 = vrsqrt.f32 %v501_v62 }
 0x1ae   : > { %v897_v63 = vpop.eup %896 }
 0x1af   : > { %v487_v3 = vmul.f32 %v897_v63, %v484_v55 }
 0x1b0   : > { %v899_v2 = vpop.eup %898 }
 0x1b1   : > { %v508_v4 = vmul.f32 %v899_v2, %v504_v0  ;;  %v509_v5 = vmul.f32 %v899_v2, %v505_v1  ;;  %v489_v9 = vsel %vm488_vm1, %v484_v55, %v487_v3 }
 0x1b2   : > { %v492_v16 = vsel %vm490_vm3, %v491_v12, %v489_v9 }
 0x1b3   : > { %v827_v7 = vpack.c.bf16 %v509_v5, %v508_v4 }
 0x1b4   : > { %v901_v6 = vpop.eup %900 }
 0x1b5   : > { %v494_v10 = vmul.f32 %v901_v6, %v485_v61  ;;  %524 = vst [vmem:[%s286_s18] sm:$0xff] %v827_v7 }
 0x1b6   : > { %v903_v14 = vpop.eup %902 }
 0x1b7   : > { %v496_v15 = vsel %vm495_vm2, %v485_v61, %v494_v10  ;;  %v510_v18 = vmul.f32 %v903_v14, %v506_v8  ;;  %v511_v19 = vmul.f32 %v903_v14, %v507_v11 }
 0x1b8   : > { %v499_v17 = vsel %vm497_vm4, %v498_v13, %v496_v15 }
 0x1b9   : > { %v851_v20 = vpack.c.bf16 %v499_v17, %v492_v16  ;;  %v828_v21 = vpack.c.bf16 %v511_v19, %v510_v18 }
 0x1bb   : > { %852 = vmatprep.subr.bf16.mxu1 %v851_v20  ;;  %525 = vst [vmem:[%s286_s18 + $0x8] sm:$0xff] %v828_v21 }
 0x1bc   : > { %854 = vmatpush3.bf16.msra.mxu1 %v851_v20 }
 0x1bd   : > { %856 = vmatprep.subr.bf16.mxu1 %v855_v22 }
 0x1bf   : > { %842 = vmatmul.mubr.msk.f32.vlgmr.msra.gmra.mrb[0].mxu1 %vm530_vm0, %v529_v23 }
 0x1c0   : > { %858 = vmatpush3.bf16.msra.mxu1 %v855_v22  ;;  %848 = vmatprep.mubr.msk.f32.mxu1 %vm530_vm0, %v526_v24 }
 0x1c7   : > { %849 = vmatmul.mubr.msk.f32.vlgmr.msra.gmra.mrb[0].mxu1 %vm530_vm0, %v527_v25 }
 0x29a   : > { %v850_v28 = vpop.f32.mrb[0].mxu1 }
 0x29b   : > { %v696_v29 = vadd.f32 %v850_v28, %v694_v26  ;;  %v684_v30 = vpop.f32.mrb[1].mxu1 }
 0x29c   : > { %v695_v31 = vadd.f32 %v693_v27, %v684_v30 }
 0x29d   : > { %699 = vst.msk [vmem:[%s291_s10 + $0x8] sm:$0xff] %vm697_vm5, %v696_v29 }
 0x29e   : > { %698 = vst.msk [vmem:[%s291_s10] sm:$0xff] %vm697_vm5, %v695_v31 }
 0x29f PF: > { %s18_s24 = sadd.s32 1, %s910_s24  }
 0x2a0   : > { %p15_p4 = scmp.ge.s32.totalorder %s18_s24, 4  }
 0x2a2   :  { %17 = sbr.rel (!%p15_p4) target bundleno = 1 (0x1), region = 86 }

// kernel: _lambda_.8
= control target key start
LH: loop header
LB: loop body
LE: loop exit
PB: predicated region body
PF: predicated region fallthrough
CT: control target
= control target key end

     0   :  { %s979_s24 = smov 0   ;;  %s1062_s0 = inlined_call_operand.vmem [shape: bf16[2,144,256], index: 0, kind: input, shape index: {}]   ;;  %s1063_s1 = inlined_call_operand.vmem [shape: bf16[16,144], index: 1, kind: input, shape index: {}]   ;;  %s1064_s2 = inlined_call_operand.vmem [shape: f32[16,1], index: 2, kind: input, shape index: {}, may-alias: {2,5}]   ;;  %s1065_s3 = inlined_call_operand.vmem [shape: f32[16,16], index: 3, kind: input, shape index: {}]   ;;  %s1066_s4 = inlined_call_operand.vmem [shape: f32[16,16], index: 4, kind: input, shape index: {}]   ;;  %s1067_s5 = inlined_call_operand.vmem [shape: f32[16,1], index: 5, kind: input, shape index: {}, may-alias: {2,5}]   ;;  %s1068_s6 = inlined_call_operand.vmem [shape: bf16[2,16,256], index: 6, kind: output, shape index: {0}]   ;;  %s1069_s7 = inlined_call_operand.vmem [shape: f32[2,16,1], index: 7, kind: output, shape index: {1}]  }
   0x1 LB: > { %s806_s25 = sadd.s32 4294967295, %s936_s24   ;;  %p810_p0 = scmp.ge.s32.totalorder %s936_s24, 1  ;;  %s936_s24 = sphi %s979_s24, %s18_s24  }
   0x2   : > { %p240_p1 = scmp.lt.s32.totalorder %s936_s24, 3 }
   0x4   : > { %p241_p2 = pnand %p810_p0, %p240_p1 }
   0x5   : > { %p277_p3 = scmp.lt.s32.totalorder (!%p241_p2), %s806_s25, 1  ;;  %vm424_vm0 = vcmask (!%p241_p2), 130048   ;;  %v921_v0 = vld [vmem:[%s1063_s1 + $0x4] ss:$8 sps:$4 sm:$0xff] (!%p241_p2)   ;;  %v938_v2 = vmov (!%p241_p2), 0   ;;  %vm715_vm5 = vcmask (!%p241_p2), 7168  }
   0x6   : > { %244 = sbr.rel (%p241_p2) target bundleno = 676 (0x2a4), region = 44  ;;  %v313_v1 = vld [vmem:[%s1064_s2] sm:$0xff] (!%p241_p2)  ;;  %891 = vset.pattern.permute.xlu0 (!%p241_p2), %v938_v2  ;;  %836 = vmatprep.mubr.msk.bf16.mxu0 (!%p241_p2), %vm424_vm0, %v921_v0  ;;  %v314_v3 = vld [vmem:[%s1064_s2 + $0x8] sm:$0xff] (!%p241_p2) }
   0x7   : > { %317 = vperm.xlu0 (!%p241_p2), %891, %v313_v1   ;;  %v919_v22 = vld [vmem:[%s1063_s1] ss:$8 sps:$4 sm:$0xff] (!%p241_p2)  }
   0x8   : > { %v547_v49 = vld [vmem:[%s1066_s4] sm:$0xff] (!%p241_p2) }
   0x9   : > { %861 = vmatprep.mubr.msk.f32.mxu1 (!%p241_p2), %vm424_vm0, %v547_v49 }
   0xb   : > { %322 = vperm.xlu0 (!%p241_p2), %891, %v314_v3  }
   0xd   : > { %s1071_s25 = smov (!%p277_p3, %s806_s25), 1 }
   0xe   : > { %s881_s30 = smul.u32 144, %s1071_s25  ;;  %s845_s17 = sshll.u32 %s1071_s25, 4 }
   0xf   : > { %s286_s20 = scalar_lea.vmem %s1068_s6, %s845_s17 }
  0x10   : > { %s1003_s12 = scalar_lea.vmem %s1062_s0, %s881_s30 }
  0x11   : > { %v892_v4 = vld [vmem:[%s1003_s12 + $0x4] ss:$8 sps:$4 sm:$0xff]   ;;  %v894_v5 = vld [vmem:[%s1003_s12] ss:$8 sps:$4 sm:$0xff]   ;;  %v895_v6 = vld [vmem:[%s1003_s12 + $0x14] ss:$8 sps:$4 sm:$0xff]  }
  0x12   : > { %428 = vmatprep.subr.bf16.mxu0 %v892_v4  ;;  %v897_v7 = vld [vmem:[%s1003_s12 + $0x10] ss:$8 sps:$4 sm:$0xff]   ;;  %v898_v8 = vld [vmem:[%s1003_s12 + $0x24] ss:$8 sps:$4 sm:$0xff]   ;;  %v900_v9 = vld [vmem:[%s1003_s12 + $0x20] ss:$8 sps:$4 sm:$0xff]  }
  0x13   : > { %429 = vmatpush1.bf16.msra.mxu0 %v894_v5  ;;  %v901_v10 = vld [vmem:[%s1003_s12 + $0x34] ss:$8 sps:$4 sm:$0xff]   ;;  %v903_v11 = vld [vmem:[%s1003_s12 + $0x30] ss:$8 sps:$4 sm:$0xff]   ;;  %v904_v12 = vld [vmem:[%s1003_s12 + $0x44] ss:$8 sps:$4 sm:$0xff]  }
  0x14   : > { %430 = vmatprep.subr.bf16.mxu0 %v895_v6  ;;  %v906_v13 = vld [vmem:[%s1003_s12 + $0x40] ss:$8 sps:$4 sm:$0xff]   ;;  %v907_v14 = vld [vmem:[%s1003_s12 + $0x54] ss:$8 sps:$4 sm:$0xff]   ;;  %v909_v15 = vld [vmem:[%s1003_s12 + $0x50] ss:$8 sps:$4 sm:$0xff]  }
  0x15   : > { %v910_v16 = vld [vmem:[%s1003_s12 + $0x64] ss:$8 sps:$4 sm:$0xff]   ;;  %v912_v17 = vld [vmem:[%s1003_s12 + $0x60] ss:$8 sps:$4 sm:$0xff]   ;;  %v913_v18 = vld [vmem:[%s1003_s12 + $0x74] ss:$8 sps:$4 sm:$0xff]  }
  0x16   : > { %v915_v19 = vld [vmem:[%s1003_s12 + $0x70] ss:$8 sps:$4 sm:$0xff]   ;;  %v916_v20 = vld [vmem:[%s1003_s12 + $0x84] ss:$8 sps:$4 sm:$0xff]   ;;  %v918_v21 = vld [vmem:[%s1003_s12 + $0x80] ss:$8 sps:$4 sm:$0xff]   ;;  %s291_s12 = scalar_lea.vmem %s1069_s7, %s845_s17 }
  0x17   : > { %431 = vmatpush1.bf16.msra.mxu0 %v897_v7 }
  0x18   : > { %432 = vmatprep.subr.bf16.mxu0 %v898_v8 }
  0x1b   : > { %433 = vmatpush1.bf16.msra.mxu0 %v900_v9 }
  0x1c   : > { %434 = vmatprep.subr.bf16.mxu0 %v901_v10 }
  0x1f   : > { %435 = vmatpush1.bf16.msra.mxu0 %v903_v11 }
  0x20   : > { %436 = vmatprep.subr.bf16.mxu0 %v904_v12 }
  0x23   : > { %437 = vmatpush1.bf16.msra.mxu0 %v906_v13 }
  0x24   : > { %438 = vmatprep.subr.bf16.mxu0 %v907_v14 }
  0x27   : > { %439 = vmatpush1.bf16.msra.mxu0 %v909_v15 }
  0x28   : > { %440 = vmatprep.subr.bf16.mxu0 %v910_v16 }
  0x2b   : > { %441 = vmatpush1.bf16.msra.mxu0 %v912_v17 }
  0x2c   : > { %442 = vmatprep.subr.bf16.mxu0 %v913_v18 }
  0x2f   : > { %443 = vmatpush1.bf16.msra.mxu0 %v915_v19 }
  0x30   : > { %444 = vmatprep.subr.bf16.mxu0 %v916_v20 }
  0x33   : > { %445 = vmatpush1.bf16.msra.mxu0 %v918_v21 }
  0x36   : > { %461 = vmatmul.mubr.bf16.vlgmr.msra.gmra.mrb[0].mxu0 %v919_v22 }
  0x86   : > { %v318_v23 = vpop.permute.xlu0 %317 }
  0x8a   : > { %v323_v25 = vpop.permute.xlu0 %322 }
 0x109   : > { %v462_v24 = vpop.f32.mrb[0].mxu0 }
 0x10a   : > { %v463_v26 = vadd.f32 %v462_v24, %v318_v23  ;;  %v464_v27 = vpop.f32.mrb[1].mxu0 }
 0x10b   : > { %v465_v28 = vadd.f32 %v464_v27, %v318_v23  ;;  %v466_v29 = vpop.f32.mrb[2].mxu0  ;;  %v545_v27 = vld [vmem:[%s1065_s3] sm:$0xff] }
 0x10c   : > { %v471_v30 = vmul.f32 0.2, %v463_v26  ;;  %v467_v31 = vadd.f32 %v466_v29, %v323_v25  ;;  %v468_v32 = vpop.f32.mrb[3].mxu0  ;;  %v712_v29 = vld [vmem:[%s1067_s5 + $0x8] sm:$0xff] }
 0x10d   : > { %v472_v33 = vmul.f32 0.2, %v465_v28  ;;  %v469_v34 = vadd.f32 %v468_v32, %v323_v25 }
 0x10e   : > { %v475_v35 = vmax.f32 %v463_v26, %v471_v30  ;;  %v473_v36 = vmul.f32 0.2, %v467_v31  ;;  %v548_v26 = vld [vmem:[%s1066_s4 + $0x8] sm:$0xff]  ;;  %v711_v30 = vld [vmem:[%s1067_s5] sm:$0xff] }
 0x10f   : > { %v476_v37 = vmax.f32 %v465_v28, %v472_v33  ;;  %v474_v38 = vmul.f32 0.2, %v469_v34  ;;  %v546_v28 = vld [vmem:[%s1065_s3 + $0x8] sm:$0xff] }
 0x110   : > { %v485_v39 = vmul.f32 %v475_v35, %v475_v35  ;;  %v477_v40 = vmax.f32 %v467_v31, %v473_v36 }
 0x111   : > { %v478_v41 = vmax.f32 %v469_v34, %v474_v38  ;;  %v479_v42 = vadd.f32 %v476_v37, %v475_v35  ;;  %v486_v43 = vmul.f32 %v476_v37, %v476_v37 }
 0x112   : > { %v487_v46 = vmul.f32 %v477_v40, %v477_v40 }
 0x113   : > { %480 = vadd.xlane.f32.xlu1 %v479_v42  ;;  %v489_v44 = vadd.f32 %v486_v43, %v485_v39  ;;  %v482_v45 = vadd.f32 %v478_v41, %v477_v40  ;;  %v488_v47 = vmul.f32 %v478_v41, %v478_v41 }
 0x115   : > { %490 = vadd.xlane.f32.xlu0 %v489_v44  ;;  %v492_v48 = vadd.f32 %v488_v47, %v487_v46 }
 0x117   : > { %483 = vadd.xlane.f32.xlu1 %v482_v45 }
 0x11b   : > { %493 = vadd.xlane.f32.xlu1 %v492_v48 }
 0x1a0   : > { %v481_v50 = vpop.xlane.xlu1 %480 }
 0x1a1   : > { %v495_v51 = vmul.f32 0.00390625, %v481_v50 }
 0x1a2   : > { %v491_v52 = vpop.xlane.xlu0 %490 }
 0x1a3   : > { %v497_v53 = vmul.f32 0.00390625, %v491_v52  ;;  %v499_v54 = vmul.f32 %v495_v51, %v495_v51  ;;  %v523_v3 = vsub.f32 %v475_v35, %v495_v51  ;;  %v524_v4 = vsub.f32 %v476_v37, %v495_v51 }
 0x1a4   : > { %v484_v55 = vpop.xlane.xlu1 %483 }
 0x1a5   : > { %v501_v56 = vsub.f32 %v497_v53, %v499_v54  ;;  %v496_v57 = vmul.f32 0.00390625, %v484_v55 }
 0x1a7   : > { %v503_v58 = vmax.f32 %v501_v56, 0.0  ;;  %v500_v60 = vmul.f32 %v496_v57, %v496_v57  ;;  %v525_v11 = vsub.f32 %v477_v40, %v496_v57  ;;  %v526_v14 = vsub.f32 %v478_v41, %v496_v57 }
 0x1a8   : > { %v494_v59 = vpop.xlane.xlu1 %493  ;;  %v875_v25 = vpack.c.bf16 %v496_v57, %v495_v51 }
 0x1a9   : > { %v498_v61 = vmul.f32 0.00390625, %v494_v59  ;;  %922 = vrsqrt.f32 %v503_v58  ;;  %v519_v62 = vadd.f32 1e-05, %v503_v58  ;;  %vm507_vm1 = vcmp.eq.f32.partialorder %v503_v58, inf }
 0x1aa   : > { %v510_v15 = vand.u32 2147483648, %v503_v58  ;;  %vm509_vm3 = vcmp.eq.f32.partialorder %v503_v58, 0.0 }
 0x1ab   : > { %v502_v63 = vsub.f32 %v498_v61, %v500_v60  ;;  %924 = vrsqrt.f32 %v519_v62 }
 0x1ad   : > { %v504_v0 = vmax.f32 %v502_v63, 0.0 }
 0x1af   : > { %926 = vrsqrt.f32 %v504_v0  ;;  %v520_v1 = vadd.f32 1e-05, %v504_v0  ;;  %vm514_vm2 = vcmp.eq.f32.partialorder %v504_v0, inf  ;;  %v517_v16 = vand.u32 2147483648, %v504_v0 }
 0x1b0   : > { %vm516_vm4 = vcmp.eq.f32.partialorder %v504_v0, 0.0 }
 0x1b1   : > { %928 = vrsqrt.f32 %v520_v1 }
 0x1b3   : > { %v923_v2 = vpop.eup %922 }
 0x1b4   : > { %v506_v6 = vmul.f32 %v923_v2, %v503_v58 }
 0x1b5   : > { %v925_v5 = vpop.eup %924 }
 0x1b6   : > { %v527_v7 = vmul.f32 %v925_v5, %v523_v3  ;;  %v528_v8 = vmul.f32 %v925_v5, %v524_v4  ;;  %v508_v12 = vsel %vm507_vm1, %v503_v58, %v506_v6 }
 0x1b7   : > { %v511_v19 = vsel %vm509_vm3, %v510_v15, %v508_v12 }
 0x1b8   : > { %v847_v10 = vpack.c.bf16 %v528_v8, %v527_v7 }
 0x1b9   : > { %v927_v9 = vpop.eup %926 }
 0x1ba   : > { %v513_v13 = vmul.f32 %v927_v9, %v504_v0  ;;  %543 = vst [vmem:[%s286_s20] sm:$0xff] %v847_v10 }
 0x1bb   : > { %v929_v17 = vpop.eup %928 }
 0x1bc   : > { %v515_v18 = vsel %vm514_vm2, %v504_v0, %v513_v13  ;;  %v529_v21 = vmul.f32 %v929_v17, %v525_v11  ;;  %v530_v22 = vmul.f32 %v929_v17, %v526_v14 }
 0x1bd   : > { %v518_v20 = vsel %vm516_vm4, %v517_v16, %v515_v18 }
 0x1be   : > { %v871_v23 = vpack.c.bf16 %v518_v20, %v511_v19  ;;  %v848_v24 = vpack.c.bf16 %v530_v22, %v529_v21 }
 0x1c0   : > { %872 = vmatprep.subr.bf16.mxu1 %v871_v23  ;;  %544 = vst [vmem:[%s286_s20 + $0x8] sm:$0xff] %v848_v24 }
 0x1c1   : > { %874 = vmatpush3.bf16.msra.mxu1 %v871_v23 }
 0x1c2   : > { %876 = vmatprep.subr.bf16.mxu1 %v875_v25 }
 0x1c4   : > { %862 = vmatmul.mubr.msk.f32.vlgmr.msra.gmra.mrb[0].mxu1 %vm424_vm0, %v548_v26 }
 0x1c5   : > { %878 = vmatpush3.bf16.msra.mxu1 %v875_v25  ;;  %868 = vmatprep.mubr.msk.f32.mxu1 %vm424_vm0, %v545_v27 }
 0x1cc   : > { %869 = vmatmul.mubr.msk.f32.vlgmr.msra.gmra.mrb[0].mxu1 %vm424_vm0, %v546_v28 }
 0x29f   : > { %v870_v31 = vpop.f32.mrb[0].mxu1 }
 0x2a0   : > { %v714_v32 = vadd.f32 %v870_v31, %v712_v29  ;;  %v702_v33 = vpop.f32.mrb[1].mxu1 }
 0x2a1   : > { %v713_v34 = vadd.f32 %v711_v30, %v702_v33 }
 0x2a2   : > { %717 = vst.msk [vmem:[%s291_s12 + $0x8] sm:$0xff] %vm715_vm5, %v714_v32 }
 0x2a3   : > { %716 = vst.msk [vmem:[%s291_s12] sm:$0xff] %vm715_vm5, %v713_v34 }
 0x2a4 PF: > { %s18_s24 = sadd.s32 1, %s936_s24  }
 0x2a5   : > { %p15_p4 = scmp.ge.s32.totalorder %s18_s24, 4  }
 0x2a7   :  { %17 = sbr.rel (!%p15_p4) target bundleno = 1 (0x1), region = 86 }

// kernel: _lambda_.9
= control target key start
LH: loop header
LB: loop body
LE: loop exit
PB: predicated region body
PF: predicated region fallthrough
CT: control target
= control target key end

     0   :  { %v1105_v1 = vmov 0   ;;  %vm433_vm0 = vcmask 1041408   ;;  %vm426_vm1 = vcmask 15360   ;;  %vm611_vm3 = vcmask 130048   ;;  %s1320_s0 = inlined_call_operand.vmem [shape: bf16[256,128], index: 0, kind: input, shape index: {}]   ;;  %s1321_s1 = inlined_call_operand.vmem [shape: bf16[16,256], index: 1, kind: input, shape index: {}]   ;;  %s1322_s2 = inlined_call_operand.vmem [shape: f32[16,1], index: 2, kind: input, shape index: {}, may-alias: {2,7}]   ;;  %s1323_s3 = inlined_call_operand.vmem [shape: f32[128,2], index: 3, kind: input, shape index: {}]   ;;  %s1324_s4 = inlined_call_operand.vmem [shape: f32[2,128], index: 4, kind: input, shape index: {}]   ;;  %s1325_s7 = inlined_call_operand.vmem [shape: f32[16,1], index: 7, kind: input, shape index: {}, may-alias: {2,7}]   ;;  %s1326_s6 = inlined_call_operand.vmem [shape: f32[16,16], index: 6, kind: input, shape index: {}]   ;;  %s1327_s5 = inlined_call_operand.vmem [shape: f32[16,16], index: 5, kind: input, shape index: {}]   ;;  %s1328_s8 = inlined_call_operand.vmem [shape: bf16[16,128], index: 8, kind: output, shape index: {0}]   ;;  %s1329_s9 = inlined_call_operand.vmem [shape: f32[16,2], index: 9, kind: output, shape index: {1}]  }
   0x1   :  { %v1078_v0 = vld [vmem:[%s1320_s0 + $0x40] sm:$0xff]   ;;  %1076 = vset.pattern.permute.xlu0 %v1105_v1  ;;  %1077 = vset.pattern.permute.xlu1 %v1105_v1  ;;  %v1080_v3 = vld [vmem:[%s1320_s0 + $0x48] sm:$0xff]   ;;  %v1082_v5 = vld [vmem:[%s1320_s0 + $0x50] sm:$0xff]  }
   0x2   :  { %v1079_v2 = vld [vmem:[%s1320_s0] sm:$0xff]   ;;  %835 = vmatprep.subr.bf16.mxu0 %v1078_v0  ;;  %v1081_v4 = vld [vmem:[%s1320_s0 + $0x8] sm:$0xff]   ;;  %v1083_v6 = vld [vmem:[%s1320_s0 + $0x10] sm:$0xff]  }
   0x3   :  { %836 = vmatpush3.bf16.msra.mxu0 %v1079_v2  ;;  %v1084_v7 = vld [vmem:[%s1320_s0 + $0x58] sm:$0xff]   ;;  %v1086_v9 = vld [vmem:[%s1320_s0 + $0x60] sm:$0xff]   ;;  %v1088_v11 = vld [vmem:[%s1320_s0 + $0x68] sm:$0xff]  }
   0x4   :  { %837 = vmatprep.subr.bf16.mxu0 %v1080_v3  ;;  %v1085_v8 = vld [vmem:[%s1320_s0 + $0x18] sm:$0xff]   ;;  %v1087_v10 = vld [vmem:[%s1320_s0 + $0x20] sm:$0xff]   ;;  %v230_v15 = vld [vmem:[%s1323_s3 + $0x8] sm:$0xff] }
   0x5   :  { %v1096_v12 = vld [vmem:[%s1321_s1 + $0x4] ss:$8 sps:$4 sm:$0xff]   ;;  %v231_v16 = vld [vmem:[%s1323_s3 + $0x10] sm:$0xff]  ;;  %v232_v20 = vld [vmem:[%s1323_s3 + $0x18] sm:$0xff] }
   0x6   :  { %v66_v13 = vld [vmem:[%s1322_s2] sm:$0xff]  ;;  %v1089_v17 = vld [vmem:[%s1320_s0 + $0x28] sm:$0xff]   ;;  %216 = vmatprep.mubr.bf16.mxu0 %v1096_v12  ;;  %v1090_v21 = vld [vmem:[%s1320_s0 + $0x70] sm:$0xff]   ;;  %v1005_v22 = vpack.c.bf16 %v232_v20, %v231_v16 }
   0x7   :  { %838 = vmatpush3.bf16.msra.mxu0 %v1081_v4  ;;  %70 = vperm.xlu0 %1076, %v66_v13   ;;  %v229_v14 = vld [vmem:[%s1323_s3] sm:$0xff]  ;;  %v67_v18 = vld [vmem:[%s1322_s2 + $0x8] sm:$0xff]  ;;  %v1091_v25 = vld [vmem:[%s1320_s0 + $0x30] sm:$0xff]  }
   0x8   :  { %839 = vmatprep.subr.bf16.mxu0 %v1082_v5  ;;  %v1001_v19 = vpack.c.bf16 %v230_v15, %v229_v14  ;;  %v233_v23 = vld [vmem:[%s1323_s3 + $0x20] sm:$0xff]  ;;  %v234_v24 = vld [vmem:[%s1323_s3 + $0x28] sm:$0xff]  ;;  %v1092_v27 = vld [vmem:[%s1320_s0 + $0x78] sm:$0xff]  }
   0x9   :  { %v1009_v26 = vpack.c.bf16 %v234_v24, %v233_v23  ;;  %v235_v28 = vld [vmem:[%s1323_s3 + $0x30] sm:$0xff]  ;;  %v236_v29 = vld [vmem:[%s1323_s3 + $0x38] sm:$0xff]  ;;  %v237_v32 = vld [vmem:[%s1323_s3 + $0x40] sm:$0xff] }
   0xa   :  { %1002 = vmatprep.subr.bf16.mxu1 %v1001_v19  ;;  %v1093_v30 = vld [vmem:[%s1320_s0 + $0x38] sm:$0xff]   ;;  %v1013_v31 = vpack.c.bf16 %v236_v29, %v235_v28  ;;  %v238_v33 = vld [vmem:[%s1323_s3 + $0x48] sm:$0xff]  ;;  %v239_v36 = vld [vmem:[%s1323_s3 + $0x50] sm:$0xff] }
   0xb   :  { %840 = vmatpush3.bf16.msra.mxu0 %v1083_v6  ;;  %75 = vperm.xlu0 %1076, %v67_v18   ;;  %v1094_v34 = vld [vmem:[%s1321_s1] ss:$8 sps:$4 sm:$0xff]   ;;  %v1017_v35 = vpack.c.bf16 %v238_v33, %v237_v32  ;;  %v240_v37 = vld [vmem:[%s1323_s3 + $0x58] sm:$0xff]  ;;  %v243_v42 = vld [vmem:[%s1323_s3 + $0x70] sm:$0xff] }
   0xc   :  { %841 = vmatprep.subr.bf16.mxu0 %v1084_v7  ;;  %1004 = vmatpush3.bf16.msra.mxu1 %v1001_v19  ;;  %v1021_v38 = vpack.c.bf16 %v240_v37, %v239_v36  ;;  %v241_v39 = vld [vmem:[%s1323_s3 + $0x60] sm:$0xff]  ;;  %v242_v40 = vld [vmem:[%s1323_s3 + $0x68] sm:$0xff]  ;;  %v244_v43 = vld [vmem:[%s1323_s3 + $0x78] sm:$0xff] }
   0xd   :  { %1006 = vmatprep.subr.bf16.mxu1 %v1005_v22  ;;  %v1025_v41 = vpack.c.bf16 %v242_v40, %v241_v39  ;;  %v1029_v44 = vpack.c.bf16 %v244_v43, %v243_v42  ;;  %v425_v61 = vld [vmem:[%s1324_s4] sm:$0x3]  ;;  %v775_v63 = vld [vmem:[%s1325_s7 + $0x8] sm:$0xff] }
   0xe   :  { %v774_v62 = vld [vmem:[%s1325_s7] sm:$0xff]  ;;  %v608_v33 = vld [vmem:[%s1327_s5 + $0x8] sm:$0xff] }
   0xf   :  { %842 = vmatpush3.bf16.msra.mxu0 %v1085_v8  ;;  %778 = vperm.xlu1 %1077, %v774_v62   ;;  %v607_v32 = vld [vmem:[%s1327_s5] sm:$0xff] }
  0x10   :  { %843 = vmatprep.subr.bf16.mxu0 %v1086_v9  ;;  %1008 = vmatpush3.bf16.msra.mxu1 %v1005_v22 }
  0x11   :  { %1010 = vmatprep.subr.bf16.mxu1 %v1009_v26 }
  0x13   :  { %844 = vmatpush3.bf16.msra.mxu0 %v1087_v10  ;;  %783 = vperm.xlu1 %1077, %v775_v63  }
  0x14   :  { %845 = vmatprep.subr.bf16.mxu0 %v1088_v11  ;;  %1012 = vmatpush3.bf16.msra.mxu1 %v1009_v26 }
  0x15   :  { %1014 = vmatprep.subr.bf16.mxu1 %v1013_v31 }
  0x17   :  { %846 = vmatpush3.bf16.msra.mxu0 %v1089_v17 }
  0x18   :  { %847 = vmatprep.subr.bf16.mxu0 %v1090_v21  ;;  %1016 = vmatpush3.bf16.msra.mxu1 %v1013_v31 }
  0x19   :  { %1018 = vmatprep.subr.bf16.mxu1 %v1017_v35 }
  0x1b   :  { %848 = vmatpush3.bf16.msra.mxu0 %v1091_v25  ;;  %v609_v25 = vld [vmem:[%s1326_s6] sm:$0xff] }
  0x1c   :  { %849 = vmatprep.subr.bf16.mxu0 %v1092_v27  ;;  %1020 = vmatpush3.bf16.msra.mxu1 %v1017_v35 }
  0x1d   :  { %1022 = vmatprep.subr.bf16.mxu1 %v1021_v38 }
  0x1f   :  { %850 = vmatpush3.bf16.msra.mxu0 %v1093_v30 }
  0x20   :  { %1034 = vmatprep.subr.bf16.mxu0 %v1001_v19  ;;  %1024 = vmatpush3.bf16.msra.mxu1 %v1021_v38 }
  0x21   :  { %1026 = vmatprep.subr.bf16.mxu1 %v1025_v41 }
  0x22   :  { %217 = vmatmul.mubr.bf16.vlgmr.msra.gmra.mrb[0].mxu0 %v1094_v34 }
  0x23   :  { %1036 = vmatpush3.bf16.msra.mxu0 %v1001_v19 }
  0x24   :  { %1038 = vmatprep.subr.bf16.mxu0 %v1005_v22  ;;  %1028 = vmatpush3.bf16.msra.mxu1 %v1025_v41 }
  0x25   :  { %1030 = vmatprep.subr.bf16.mxu1 %v1029_v44 }
  0x27   :  { %1040 = vmatpush3.bf16.msra.mxu0 %v1005_v22 }
  0x28   :  { %1042 = vmatprep.subr.bf16.mxu0 %v1009_v26  ;;  %1032 = vmatpush3.bf16.msra.mxu1 %v1029_v44 }
  0x29   :  { %977 = vmatprep.subr.msk.mxu1 %vm433_vm0, %v425_v61 }
  0x2b   :  { %1044 = vmatpush3.bf16.msra.mxu0 %v1009_v26 }
  0x2c   :  { %1046 = vmatprep.subr.bf16.mxu0 %v1013_v31 }
  0x2f   :  { %1048 = vmatpush3.bf16.msra.mxu0 %v1013_v31  ;;  %v610_v31 = vld [vmem:[%s1326_s6 + $0x8] sm:$0xff] }
  0x30   :  { %1050 = vmatprep.subr.bf16.mxu0 %v1017_v35 }
  0x33   :  { %1052 = vmatpush3.bf16.msra.mxu0 %v1017_v35 }
  0x34   :  { %1054 = vmatprep.subr.bf16.mxu0 %v1021_v38 }
  0x37   :  { %1056 = vmatpush3.bf16.msra.mxu0 %v1021_v38 }
  0x38   :  { %1058 = vmatprep.subr.bf16.mxu0 %v1025_v41 }
  0x3b   :  { %1060 = vmatpush3.bf16.msra.mxu0 %v1025_v41 }
  0x3c   :  { %1062 = vmatprep.subr.bf16.mxu0 %v1029_v44 }
  0x3f   :  { %1064 = vmatpush3.bf16.msra.mxu0 %v1029_v44 }
  0x86   :  { %v71_v45 = vpop.permute.xlu0 %70 }
  0x8a   :  { %v76_v53 = vpop.permute.xlu0 %75 }
  0x8e   :  { %v779_v43 = vpop.permute.xlu1 %778 }
  0x92   :  { %v784_v44 = vpop.permute.xlu1 %783 }
  0xf5   :  { %v851_v46 = vpop.f32.mrb[0].mxu0 }
  0xf6   :  { %v852_v47 = vpop.f32.mrb[1].mxu0 }
  0xf7   :  { %v853_v48 = vadd.f32 %v852_v47, %v851_v46  ;;  %v854_v49 = vpop.f32.mrb[2].mxu0 }
  0xf8   :  { %v855_v50 = vpop.f32.mrb[3].mxu0 }
  0xf9   :  { %v219_v51 = vadd.f32 %v853_v48, %v71_v45  ;;  %v856_v52 = vadd.f32 %v855_v50, %v854_v49 }
  0xfb   :  { %v225_v54 = vmul.f32 0.2, %v219_v51  ;;  %v222_v55 = vadd.f32 %v856_v52, %v76_v53 }
  0xfd   :  { %v226_v56 = vmul.f32 0.2, %v222_v55  ;;  %v1264_v57 = vmax.f32 %v219_v51, %v225_v54 }
  0xff   :  { %939 = vmatprep.mubr.f32.mxu1 %v1264_v57  ;;  %v1267_v58 = vmax.f32 %v222_v55, %v226_v56  ;;  %v320_v59 = vmul.f32 %v1264_v57, %v1264_v57 }
 0x101   :  { %940 = vmatmul.mubr.f32.vlgmr.msra.gmra.mrb[0].mxu1 %v1267_v58  ;;  %974 = vmatprep.mubr.f32.mxu0 %v320_v59  ;;  %v321_v60 = vmul.f32 %v1267_v58, %v1267_v58 }
 0x102   :  { %978 = vmatpush3.msk.msra.mxu1 %vm433_vm0, %v425_v61 }
 0x103   :  { %975 = vmatmul.mubr.f32.vlgmr.msra.gmra.mrb[4].mxu0 %v321_v60  ;;  %982 = vmatprep.subr.msk.mxu1 %vm433_vm0, %v425_v61 }
 0x1d4   :  { %v941_v0 = vpop.f32.mrb[0].mxu1 }
 0x1d5   :  { %v398_v1 = vmul.f32 0.015625, %v941_v0  ;;  %v311_v2 = vpop.f32.mrb[1].mxu1 }
 0x1d6   :  { %v397_v3 = vmul.f32 0.015625, %v311_v2  ;;  %v976_v4 = vpop.f32.mrb[4].mxu0 }
 0x1d7   :  { %v400_v5 = vmul.f32 0.015625, %v976_v4  ;;  %v402_v6 = vmul.f32 %v398_v1, %v398_v1  ;;  %v388_v7 = vpop.f32.mrb[5].mxu0 }
 0x1d8   :  { %v399_v8 = vmul.f32 0.015625, %v388_v7  ;;  %v401_v9 = vmul.f32 %v397_v3, %v397_v3  ;;  %979 = vmatprep.mubr.msk.f32.mxu1 %vm426_vm1, %v397_v3  ;;  %v1069_v10 = vpack.c.bf16 %v398_v1, %v397_v3 }
 0x1d9   :  { %v404_v11 = vsub.f32 %v400_v5, %v402_v6  ;;  %980 = vmatmul.mubr.msk.f32.vlgmr.msra.gmra.mrb[2].mxu1 %vm426_vm1, %v398_v1 }
 0x1da   :  { %v403_v12 = vsub.f32 %v399_v8, %v401_v9  ;;  %983 = vmatpush3.msk.msra.mxu1 %vm433_vm0, %v425_v61 }
 0x1db   :  { %v406_v13 = vmax.f32 %v404_v11, 0.0 }
 0x1dc   :  { %v405_v14 = vmax.f32 %v403_v12, 0.0 }
 0x1dd   :  { %v422_v15 = vadd.f32 1e-05, %v406_v13  ;;  %1097 = vrsqrt.f32 %v406_v13  ;;  %vm416_vm2 = vcmp.eq.f32.partialorder %v406_v13, inf  ;;  %v419_v21 = vand.u32 2147483648, %v406_v13 }
 0x1de   :  { %v421_v16 = vadd.f32 1e-05, %v405_v14  ;;  %1099 = vrsqrt.f32 %v405_v14  ;;  %vm409_vm4 = vcmp.eq.f32.partialorder %v405_v14, inf  ;;  %v412_v23 = vand.u32 2147483648, %v405_v14 }
 0x1df   :  { %vm418_vm5 = vcmp.eq.f32.partialorder %v406_v13, 0.0  ;;  %vm411_vm6 = vcmp.eq.f32.partialorder %v405_v14, 0.0 }
 0x1e0   :  { %1101 = vrsqrt.f32 %v421_v16 }
 0x1e1   :  { %1103 = vrsqrt.f32 %v422_v15 }
 0x1e7   :  { %v1098_v17 = vpop.eup %1097 }
 0x1e8   :  { %v1100_v18 = vpop.eup %1099  ;;  %v415_v19 = vmul.f32 %v1098_v17, %v406_v13 }
 0x1e9   :  { %v408_v20 = vmul.f32 %v1100_v18, %v405_v14 }
 0x1ea   :  { %v1102_v22 = vpop.eup %1101  ;;  %v417_v24 = vsel %vm416_vm2, %v406_v13, %v415_v19 }
 0x1eb   :  { %v1104_v26 = vpop.eup %1103  ;;  %984 = vmatprep.mubr.msk.f32.mxu1 %vm426_vm1, %v1102_v22  ;;  %v410_v27 = vsel %vm409_vm4, %v405_v14, %v408_v20  ;;  %v420_v28 = vsel %vm418_vm5, %v419_v21, %v417_v24 }
 0x1ec   :  { %985 = vmatmul.mubr.msk.f32.vlgmr.msra.gmra.mrb[4].mxu1 %vm426_vm1, %v1104_v26  ;;  %v413_v29 = vsel %vm411_vm6, %v412_v23, %v410_v27 }
 0x1ed   :  { %v1065_v30 = vpack.c.bf16 %v420_v28, %v413_v29  ;;  %991 = vmatprep.mubr.msk.f32.mxu1 %vm611_vm3, %v609_v25 }
 0x1ef   :  { %1066 = vmatprep.subr.bf16.mxu1 %v1065_v30 }
 0x1f0   :  { %1068 = vmatpush3.bf16.msra.mxu1 %v1065_v30 }
 0x1f1   :  { %1070 = vmatprep.subr.bf16.mxu1 %v1069_v10 }
 0x1f3   :  { %992 = vmatmul.mubr.msk.f32.vlgmr.msra.gmra.mrb[6].mxu1 %vm611_vm3, %v610_v31 }
 0x1f4   :  { %1072 = vmatpush3.bf16.msra.mxu1 %v1069_v10  ;;  %998 = vmatprep.mubr.msk.f32.mxu1 %vm611_vm3, %v607_v32 }
 0x1fb   :  { %999 = vmatmul.mubr.msk.f32.vlgmr.msra.gmra.mrb[6].mxu1 %vm611_vm3, %v608_v33 }
 0x2ac   :  { %v981_v34 = vpop.f32.mrb[2].mxu1 }
 0x2ad   :  { %v503_v35 = vpop.f32.mrb[3].mxu1  ;;  %v594_v36 = vsub.f32 %v1267_v58, %v981_v34 }
 0x2ae   :  { %v593_v37 = vsub.f32 %v1264_v57, %v503_v35 }
 0x2bf   :  { %v986_v38 = vpop.f32.mrb[4].mxu1 }
 0x2c0   :  { %v596_v39 = vmul.f32 %v986_v38, %v594_v36  ;;  %v584_v40 = vpop.f32.mrb[5].mxu1 }
 0x2c1   :  { %v595_v41 = vmul.f32 %v593_v37, %v584_v40 }
 0x2c3   :  { %v833_v42 = vpack.c.bf16 %v596_v39, %v595_v41 }
 0x2c5   :  { %834 = vst [vmem:[%s1328_s8] sm:$0xff] %v833_v42  }
 0x2ce   :  { %v1000_v45 = vpop.f32.mrb[6].mxu1 }
 0x2cf   :  { %v787_v46 = vadd.f32 %v1000_v45, %v784_v44  ;;  %v765_v47 = vpop.f32.mrb[7].mxu1 }
 0x2d0   :  { %v786_v48 = vadd.f32 %v779_v43, %v765_v47 }
 0x2d1   :  { %789 = vst.msk [vmem:[%s1329_s9 + $0x8] sm:$0xff] %vm426_vm1, %v787_v46 }
 0x2d2   :  { %788 = vst.msk [vmem:[%s1329_s9] sm:$0xff] %vm426_vm1, %v786_v48 }

// kernel: _lambda_.10
= control target key start
LH: loop header
LB: loop body
LE: loop exit
PB: predicated region body
PF: predicated region fallthrough
CT: control target
= control target key end

     0   :  { %v1016_v0 = vmov 0   ;;  %vm127_vm0 = vcmask 130048   ;;  %vm380_vm1 = vcmask 1041408   ;;  %vm373_vm2 = vcmask 15360   ;;  %s1240_s0 = inlined_call_operand.vmem [shape: bf16[144,128], index: 0, kind: input, shape index: {}]   ;;  %s1241_s1 = inlined_call_operand.vmem [shape: bf16[16,144], index: 1, kind: input, shape index: {}]   ;;  %s1242_s2 = inlined_call_operand.vmem [shape: f32[16,1], index: 2, kind: input, shape index: {}, may-alias: {2,7}]   ;;  %s1243_s3 = inlined_call_operand.vmem [shape: f32[128,2], index: 3, kind: input, shape index: {}]   ;;  %s1244_s4 = inlined_call_operand.vmem [shape: f32[2,128], index: 4, kind: input, shape index: {}]   ;;  %s1245_s7 = inlined_call_operand.vmem [shape: f32[16,1], index: 7, kind: input, shape index: {}, may-alias: {2,7}]   ;;  %s1246_s6 = inlined_call_operand.vmem [shape: f32[16,16], index: 6, kind: input, shape index: {}]   ;;  %s1247_s5 = inlined_call_operand.vmem [shape: f32[16,16], index: 5, kind: input, shape index: {}]   ;;  %s1248_s8 = inlined_call_operand.vmem [shape: bf16[16,128], index: 8, kind: output, shape index: {0}]   ;;  %s1249_s9 = inlined_call_operand.vmem [shape: f32[16,2], index: 9, kind: output, shape index: {1}]  }
   0x1   :  { %131 = vmatprep.subr.bf16.mxu0 %v1016_v0  ;;  %v996_v1 = vld [vmem:[%s1240_s0] sm:$0xff]   ;;  %994 = vset.pattern.permute.xlu0 %v1016_v0  ;;  %v997_v2 = vld [vmem:[%s1240_s0 + $0x8] sm:$0xff]   ;;  %v998_v3 = vld [vmem:[%s1240_s0 + $0x10] sm:$0xff]  }
   0x2   :  { %995 = vset.pattern.permute.xlu1 %v1016_v0  ;;  %132 = vmatpush1.bf16.msra.mxu0 %v996_v1  ;;  %v999_v4 = vld [vmem:[%s1240_s0 + $0x18] sm:$0xff]   ;;  %v1007_v5 = vld [vmem:[%s1241_s1 + $0x4] ss:$8 sps:$4 sm:$0xff]   ;;  %v178_v9 = vld [vmem:[%s1243_s3 + $0x10] sm:$0xff] }
   0x3   :  { %133 = vmatprep.subr.bf16.mxu0 %v1016_v0  ;;  %v52_v6 = vld [vmem:[%s1242_s2] sm:$0xff]  ;;  %v177_v8 = vld [vmem:[%s1243_s3 + $0x8] sm:$0xff]  ;;  %755 = vmatprep.mubr.msk.bf16.mxu0 %vm127_vm0, %v1007_v5  ;;  %v179_v12 = vld [vmem:[%s1243_s3 + $0x18] sm:$0xff] }
   0x4   :  { %56 = vperm.xlu0 %994, %v52_v6   ;;  %v176_v7 = vld [vmem:[%s1243_s3] sm:$0xff]  ;;  %v53_v10 = vld [vmem:[%s1242_s2 + $0x8] sm:$0xff]  ;;  %v1109_v13 = vpack.c.bf16 %v179_v12, %v178_v9  ;;  %v182_v19 = vld [vmem:[%s1243_s3 + $0x30] sm:$0xff] }
   0x5   :  { %v1104_v11 = vpack.c.bf16 %v177_v8, %v176_v7  ;;  %v1000_v14 = vld [vmem:[%s1240_s0 + $0x20] sm:$0xff]   ;;  %v181_v16 = vld [vmem:[%s1243_s3 + $0x28] sm:$0xff]  ;;  %v183_v20 = vld [vmem:[%s1243_s3 + $0x38] sm:$0xff] }
   0x6   :  { %134 = vmatpush1.bf16.msra.mxu0 %v997_v2  ;;  %v180_v15 = vld [vmem:[%s1243_s3 + $0x20] sm:$0xff]  ;;  %v1001_v18 = vld [vmem:[%s1240_s0 + $0x28] sm:$0xff]   ;;  %v931_v21 = vpack.c.bf16 %v183_v20, %v182_v19  ;;  %v1002_v22 = vld [vmem:[%s1240_s0 + $0x30] sm:$0xff]  }
   0x7   :  { %135 = vmatprep.subr.bf16.mxu0 %v1016_v0  ;;  %920 = vmatprep.subr.bf16.mxu1 %v1104_v11  ;;  %v1124_v17 = vpack.c.bf16 %v181_v16, %v180_v15  ;;  %v184_v23 = vld [vmem:[%s1243_s3 + $0x40] sm:$0xff]  ;;  %v185_v24 = vld [vmem:[%s1243_s3 + $0x48] sm:$0xff]  ;;  %v1003_v26 = vld [vmem:[%s1240_s0 + $0x38] sm:$0xff]  }
   0x8   :  { %61 = vperm.xlu0 %994, %v53_v10   ;;  %922 = vmatpush3.bf16.msra.mxu1 %v1104_v11  ;;  %v935_v25 = vpack.c.bf16 %v185_v24, %v184_v23  ;;  %v186_v27 = vld [vmem:[%s1243_s3 + $0x50] sm:$0xff]  ;;  %v187_v28 = vld [vmem:[%s1243_s3 + $0x58] sm:$0xff]  ;;  %v1004_v30 = vld [vmem:[%s1240_s0 + $0x40] sm:$0xff]  }
   0x9   :  { %924 = vmatprep.subr.bf16.mxu1 %v1109_v13  ;;  %v939_v29 = vpack.c.bf16 %v187_v28, %v186_v27  ;;  %v1005_v31 = vld [vmem:[%s1241_s1] ss:$8 sps:$4 sm:$0xff]   ;;  %v190_v35 = vld [vmem:[%s1243_s3 + $0x70] sm:$0xff]  ;;  %v191_v36 = vld [vmem:[%s1243_s3 + $0x78] sm:$0xff] }
   0xa   :  { %136 = vmatpush1.bf16.msra.mxu0 %v998_v3  ;;  %v188_v32 = vld [vmem:[%s1243_s3 + $0x60] sm:$0xff]  ;;  %v189_v33 = vld [vmem:[%s1243_s3 + $0x68] sm:$0xff]  ;;  %v947_v37 = vpack.c.bf16 %v191_v36, %v190_v35 }
   0xb   :  { %137 = vmatprep.subr.bf16.mxu0 %v1016_v0  ;;  %v943_v34 = vpack.c.bf16 %v189_v33, %v188_v32  ;;  %v372_v52 = vld [vmem:[%s1244_s4] sm:$0x3]  ;;  %v721_v54 = vld [vmem:[%s1245_s7 + $0x8] sm:$0xff] }
   0xc   :  { %926 = vmatpush3.bf16.msra.mxu1 %v1109_v13  ;;  %v720_v53 = vld [vmem:[%s1245_s7] sm:$0xff]  ;;  %v555_v24 = vld [vmem:[%s1247_s5 + $0x8] sm:$0xff] }
   0xd   :  { %928 = vmatprep.subr.bf16.mxu1 %v1124_v17  ;;  %724 = vperm.xlu1 %995, %v720_v53   ;;  %v556_v16 = vld [vmem:[%s1246_s6] sm:$0xff] }
   0xe   :  { %138 = vmatpush1.bf16.msra.mxu0 %v999_v4  ;;  %v554_v23 = vld [vmem:[%s1247_s5] sm:$0xff] }
   0xf   :  { %139 = vmatprep.subr.bf16.mxu0 %v1016_v0 }
  0x10   :  { %930 = vmatpush3.bf16.msra.mxu1 %v1124_v17 }
  0x11   :  { %932 = vmatprep.subr.bf16.mxu1 %v931_v21  ;;  %729 = vperm.xlu1 %995, %v721_v54  }
  0x12   :  { %140 = vmatpush1.bf16.msra.mxu0 %v1000_v14 }
  0x13   :  { %141 = vmatprep.subr.bf16.mxu0 %v1016_v0 }
  0x14   :  { %934 = vmatpush3.bf16.msra.mxu1 %v931_v21 }
  0x15   :  { %936 = vmatprep.subr.bf16.mxu1 %v935_v25 }
  0x16   :  { %142 = vmatpush1.bf16.msra.mxu0 %v1001_v18 }
  0x17   :  { %143 = vmatprep.subr.bf16.mxu0 %v1016_v0 }
  0x18   :  { %938 = vmatpush3.bf16.msra.mxu1 %v935_v25 }
  0x19   :  { %940 = vmatprep.subr.bf16.mxu1 %v939_v29 }
  0x1a   :  { %144 = vmatpush1.bf16.msra.mxu0 %v1002_v22  ;;  %v557_v22 = vld [vmem:[%s1246_s6 + $0x8] sm:$0xff] }
  0x1b   :  { %145 = vmatprep.subr.bf16.mxu0 %v1016_v0 }
  0x1c   :  { %942 = vmatpush3.bf16.msra.mxu1 %v939_v29 }
  0x1d   :  { %944 = vmatprep.subr.bf16.mxu1 %v943_v34 }
  0x1e   :  { %146 = vmatpush1.bf16.msra.mxu0 %v1003_v26 }
  0x1f   :  { %147 = vmatprep.subr.bf16.mxu0 %v1016_v0 }
  0x20   :  { %946 = vmatpush3.bf16.msra.mxu1 %v943_v34 }
  0x21   :  { %948 = vmatprep.subr.bf16.mxu1 %v947_v37 }
  0x22   :  { %148 = vmatpush1.bf16.msra.mxu0 %v1004_v30 }
  0x23   :  { %895 = vmatprep.subr.msk.mxu0 %vm380_vm1, %v372_v52 }
  0x24   :  { %950 = vmatpush3.bf16.msra.mxu1 %v947_v37 }
  0x25   :  { %164 = vmatmul.mubr.bf16.vlgmr.msra.gmra.mrb[0].mxu0 %v1005_v31  ;;  %952 = vmatprep.subr.bf16.mxu1 %v1104_v11 }
  0x26   :  { %896 = vmatpush3.msk.msra.mxu0 %vm380_vm1, %v372_v52 }
  0x27   :  { %900 = vmatprep.subr.msk.mxu0 %vm380_vm1, %v372_v52 }
  0x83   :  { %v57_v38 = vpop.permute.xlu0 %56 }
  0x87   :  { %v62_v42 = vpop.permute.xlu0 %61 }
  0xf8   :  { %v165_v39 = vpop.f32.mrb[0].mxu0 }
  0xf9   :  { %v166_v40 = vadd.f32 %v165_v39, %v57_v38  ;;  %v167_v41 = vpop.f32.mrb[1].mxu0 }
  0xfa   :  { %v168_v43 = vpop.f32.mrb[2].mxu0 }
  0xfb   :  { %v172_v44 = vmul.f32 0.2, %v166_v40  ;;  %v169_v45 = vadd.f32 %v168_v43, %v62_v42  ;;  %v170_v46 = vpop.f32.mrb[3].mxu0 }
  0xfd   :  { %v1179_v47 = vmax.f32 %v166_v40, %v172_v44  ;;  %v173_v48 = vmul.f32 0.2, %v169_v45 }
  0xff   :  { %v1181_v49 = vmax.f32 %v169_v45, %v173_v48  ;;  %857 = vmatprep.mubr.f32.mxu1 %v1179_v47  ;;  %v267_v50 = vmul.f32 %v1179_v47, %v1179_v47 }
 0x101   :  { %858 = vmatmul.mubr.f32.vlgmr.msra.gmra.mrb[0].mxu1 %v1181_v49  ;;  %v268_v51 = vmul.f32 %v1181_v49, %v1181_v49 }
 0x102   :  { %954 = vmatpush3.bf16.msra.mxu1 %v1104_v11  ;;  %892 = vmatprep.mubr.f32.mxu1 %v267_v50 }
 0x103   :  { %956 = vmatprep.subr.bf16.mxu1 %v1109_v13 }
 0x106   :  { %958 = vmatpush3.bf16.msra.mxu1 %v1109_v13 }
 0x107   :  { %960 = vmatprep.subr.bf16.mxu1 %v1124_v17 }
 0x10a   :  { %962 = vmatpush3.bf16.msra.mxu1 %v1124_v17 }
 0x10b   :  { %964 = vmatprep.subr.bf16.mxu1 %v931_v21 }
 0x10e   :  { %966 = vmatpush3.bf16.msra.mxu1 %v931_v21 }
 0x10f   :  { %968 = vmatprep.subr.bf16.mxu1 %v935_v25 }
 0x112   :  { %970 = vmatpush3.bf16.msra.mxu1 %v935_v25 }
 0x113   :  { %972 = vmatprep.subr.bf16.mxu1 %v939_v29 }
 0x116   :  { %974 = vmatpush3.bf16.msra.mxu1 %v939_v29 }
 0x117   :  { %976 = vmatprep.subr.bf16.mxu1 %v943_v34 }
 0x11a   :  { %978 = vmatpush3.bf16.msra.mxu1 %v943_v34  ;;  %v725_v34 = vpop.permute.xlu1 %724 }
 0x11b   :  { %980 = vmatprep.subr.bf16.mxu1 %v947_v37 }
 0x11e   :  { %982 = vmatpush3.bf16.msra.mxu1 %v947_v37  ;;  %v730_v35 = vpop.permute.xlu1 %729 }
 0x121   :  { %893 = vmatmul.mubr.f32.vlgmr.msra.gmra.mrb[2].mxu1 %v268_v51 }
 0x1d4   :  { %v859_v55 = vpop.f32.mrb[0].mxu1 }
 0x1d5   :  { %v345_v56 = vmul.f32 0.015625, %v859_v55  ;;  %v258_v57 = vpop.f32.mrb[1].mxu1 }
 0x1d6   :  { %v344_v58 = vmul.f32 0.015625, %v258_v57 }
 0x1d7   :  { %v349_v62 = vmul.f32 %v345_v56, %v345_v56 }
 0x1d8   :  { %897 = vmatprep.mubr.msk.f32.mxu0 %vm373_vm2, %v344_v58  ;;  %v987_v59 = vpack.c.bf16 %v345_v56, %v344_v58  ;;  %v348_v1 = vmul.f32 %v344_v58, %v344_v58 }
 0x1d9   :  { %898 = vmatmul.mubr.msk.f32.vlgmr.msra.gmra.mrb[4].mxu0 %vm373_vm2, %v345_v56 }
 0x1da   :  { %901 = vmatpush3.msk.msra.mxu0 %vm380_vm1, %v372_v52 }
 0x1f4   :  { %v894_v60 = vpop.f32.mrb[2].mxu1 }
 0x1f5   :  { %v347_v61 = vmul.f32 0.015625, %v894_v60  ;;  %v335_v63 = vpop.f32.mrb[3].mxu1 }
 0x1f6   :  { %v346_v0 = vmul.f32 0.015625, %v335_v63 }
 0x1f7   :  { %v351_v2 = vsub.f32 %v347_v61, %v349_v62 }
 0x1f8   :  { %v350_v3 = vsub.f32 %v346_v0, %v348_v1 }
 0x1f9   :  { %v353_v4 = vmax.f32 %v351_v2, 0.0 }
 0x1fa   :  { %v352_v5 = vmax.f32 %v350_v3, 0.0 }
 0x1fb   :  { %v369_v6 = vadd.f32 1e-05, %v353_v4  ;;  %1008 = vrsqrt.f32 %v353_v4  ;;  %vm363_vm3 = vcmp.eq.f32.partialorder %v353_v4, inf  ;;  %v366_v12 = vand.u32 2147483648, %v353_v4 }
 0x1fc   :  { %v368_v7 = vadd.f32 1e-05, %v352_v5  ;;  %1010 = vrsqrt.f32 %v352_v5  ;;  %vm356_vm4 = vcmp.eq.f32.partialorder %v352_v5, inf  ;;  %v359_v14 = vand.u32 2147483648, %v352_v5 }
 0x1fd   :  { %vm365_vm5 = vcmp.eq.f32.partialorder %v353_v4, 0.0  ;;  %vm358_vm6 = vcmp.eq.f32.partialorder %v352_v5, 0.0 }
 0x1fe   :  { %1012 = vrsqrt.f32 %v368_v7 }
 0x1ff   :  { %1014 = vrsqrt.f32 %v369_v6 }
 0x205   :  { %v1009_v8 = vpop.eup %1008 }
 0x206   :  { %v1011_v9 = vpop.eup %1010  ;;  %v362_v10 = vmul.f32 %v1009_v8, %v353_v4 }
 0x207   :  { %v355_v11 = vmul.f32 %v1011_v9, %v352_v5 }
 0x208   :  { %v1013_v13 = vpop.eup %1012  ;;  %v364_v15 = vsel %vm363_vm3, %v353_v4, %v362_v10 }
 0x209   :  { %v1015_v17 = vpop.eup %1014  ;;  %902 = vmatprep.mubr.msk.f32.mxu0 %vm373_vm2, %v1013_v13  ;;  %v357_v18 = vsel %vm356_vm4, %v352_v5, %v355_v11  ;;  %v367_v19 = vsel %vm365_vm5, %v366_v12, %v364_v15 }
 0x20a   :  { %903 = vmatmul.mubr.msk.f32.vlgmr.msra.gmra.mrb[6].mxu0 %vm373_vm2, %v1015_v17  ;;  %v360_v20 = vsel %vm358_vm6, %v359_v14, %v357_v18 }
 0x20b   :  { %v983_v21 = vpack.c.bf16 %v367_v19, %v360_v20  ;;  %909 = vmatprep.mubr.msk.f32.mxu0 %vm127_vm0, %v556_v16 }
 0x20d   :  { %984 = vmatprep.subr.bf16.mxu0 %v983_v21 }
 0x20e   :  { %986 = vmatpush3.bf16.msra.mxu0 %v983_v21 }
 0x20f   :  { %988 = vmatprep.subr.bf16.mxu0 %v987_v59 }
 0x211   :  { %910 = vmatmul.mubr.msk.f32.vlgmr.msra.gmra.mrb[8].mxu0 %vm127_vm0, %v557_v22 }
 0x212   :  { %990 = vmatpush3.bf16.msra.mxu0 %v987_v59  ;;  %916 = vmatprep.mubr.msk.f32.mxu0 %vm127_vm0, %v554_v23 }
 0x219   :  { %917 = vmatmul.mubr.msk.f32.vlgmr.msra.gmra.mrb[8].mxu0 %vm127_vm0, %v555_v24 }
 0x2ac   :  { %v899_v25 = vpop.f32.mrb[4].mxu0 }
 0x2ad   :  { %v450_v26 = vpop.f32.mrb[5].mxu0  ;;  %v541_v27 = vsub.f32 %v1181_v49, %v899_v25 }
 0x2ae   :  { %v540_v28 = vsub.f32 %v1179_v47, %v450_v26 }
 0x2dd   :  { %v904_v29 = vpop.f32.mrb[6].mxu0 }
 0x2de   :  { %v543_v30 = vmul.f32 %v904_v29, %v541_v27  ;;  %v531_v31 = vpop.f32.mrb[7].mxu0 }
 0x2df   :  { %v542_v32 = vmul.f32 %v540_v28, %v531_v31 }
 0x2e1   :  { %v773_v33 = vpack.c.bf16 %v543_v30, %v542_v32 }
 0x2e3   :  { %774 = vst [vmem:[%s1248_s8] sm:$0xff] %v773_v33  }
 0x2ec   :  { %v918_v36 = vpop.f32.mrb[8].mxu0 }
 0x2ed   :  { %v733_v37 = vadd.f32 %v918_v36, %v730_v35  ;;  %v711_v38 = vpop.f32.mrb[9].mxu0 }
 0x2ee   :  { %v732_v39 = vadd.f32 %v725_v34, %v711_v38 }
 0x2ef   :  { %735 = vst.msk [vmem:[%s1249_s9 + $0x8] sm:$0xff] %vm373_vm2, %v733_v37 }
 0x2f0   :  { %734 = vst.msk [vmem:[%s1249_s9] sm:$0xff] %vm373_vm2, %v732_v39 }

// kernel: _lambda_.11
= control target key start
LH: loop header
LB: loop body
LE: loop exit
PB: predicated region body
PF: predicated region fallthrough
CT: control target
= control target key end

     0   :  { %v973_v1 = vmov 0   ;;  %vm233_vm0 = vcmask 261120   ;;  %vm434_vm1 = vcmask 1041408   ;;  %vm427_vm2 = vcmask 15360   ;;  %s1161_s0 = inlined_call_operand.vmem [shape: bf16[256,32], index: 0, kind: input, shape index: {}]   ;;  %s1162_s1 = inlined_call_operand.vmem [shape: bf16[16,256], index: 1, kind: input, shape index: {}]   ;;  %s1163_s2 = inlined_call_operand.vmem [shape: f32[16,1], index: 2, kind: input, shape index: {}, may-alias: {2,7}]   ;;  %s1164_s3 = inlined_call_operand.vmem [shape: f32[32,2], index: 3, kind: input, shape index: {}]   ;;  %s1165_s4 = inlined_call_operand.vmem [shape: f32[2,32], index: 4, kind: input, shape index: {}]   ;;  %s1166_s7 = inlined_call_operand.vmem [shape: f32[16,1], index: 7, kind: input, shape index: {}, may-alias: {2,7}]   ;;  %s1167_s6 = inlined_call_operand.vmem [shape: f32[16,16], index: 6, kind: input, shape index: {}]   ;;  %s1168_s5 = inlined_call_operand.vmem [shape: f32[16,16], index: 5, kind: input, shape index: {}]   ;;  %s1169_s8 = inlined_call_operand.vmem [shape: f32[16,32], index: 8, kind: output, shape index: {0}]   ;;  %s1170_s9 = inlined_call_operand.vmem [shape: f32[16,2], index: 9, kind: output, shape index: {1}]  }
   0x1   :  { %v946_v0 = vld [vmem:[%s1161_s0 + $0x40] sm:$0xff]   ;;  %944 = vset.pattern.permute.xlu0 %v973_v1  ;;  %945 = vset.pattern.permute.xlu1 %v973_v1  ;;  %v948_v3 = vld [vmem:[%s1161_s0 + $0x48] sm:$0xff]   ;;  %v950_v5 = vld [vmem:[%s1161_s0 + $0x50] sm:$0xff]   ;;  %vm604_vm4 = vcmask 130048  }
   0x2   :  { %v947_v2 = vld [vmem:[%s1161_s0] sm:$0xff]   ;;  %823 = vmatprep.subr.bf16.mxu0 %v946_v0  ;;  %v949_v4 = vld [vmem:[%s1161_s0 + $0x8] sm:$0xff]   ;;  %v951_v6 = vld [vmem:[%s1161_s0 + $0x10] sm:$0xff]  }
   0x3   :  { %824 = vmatpush3.bf16.msra.mxu0 %v947_v2  ;;  %v952_v7 = vld [vmem:[%s1161_s0 + $0x58] sm:$0xff]   ;;  %v954_v9 = vld [vmem:[%s1161_s0 + $0x60] sm:$0xff]   ;;  %v956_v11 = vld [vmem:[%s1161_s0 + $0x68] sm:$0xff]  }
   0x4   :  { %825 = vmatprep.subr.bf16.mxu0 %v948_v3  ;;  %v953_v8 = vld [vmem:[%s1161_s0 + $0x18] sm:$0xff]   ;;  %v955_v10 = vld [vmem:[%s1161_s0 + $0x20] sm:$0xff]   ;;  %v957_v14 = vld [vmem:[%s1161_s0 + $0x28] sm:$0xff]  }
   0x5   :  { %v964_v12 = vld [vmem:[%s1162_s1 + $0x4] ss:$8 sps:$4 sm:$0xff]   ;;  %v958_v16 = vld [vmem:[%s1161_s0 + $0x70] sm:$0xff]   ;;  %v960_v18 = vld [vmem:[%s1161_s0 + $0x78] sm:$0xff]  }
   0x6   :  { %v66_v13 = vld [vmem:[%s1163_s2] sm:$0xff]  ;;  %216 = vmatprep.mubr.bf16.mxu0 %v964_v12  ;;  %v67_v15 = vld [vmem:[%s1163_s2 + $0x8] sm:$0xff]  ;;  %v959_v17 = vld [vmem:[%s1161_s0 + $0x30] sm:$0xff]  }
   0x7   :  { %826 = vmatpush3.bf16.msra.mxu0 %v949_v4  ;;  %70 = vperm.xlu0 %944, %v66_v13   ;;  %v961_v19 = vld [vmem:[%s1161_s0 + $0x38] sm:$0xff]   ;;  %v962_v20 = vld [vmem:[%s1162_s1] ss:$8 sps:$4 sm:$0xff]   ;;  %v231_v24 = vld [vmem:[%s1164_s3 + $0x10] sm:$0xff] }
   0x8   :  { %827 = vmatprep.subr.bf16.mxu0 %v950_v5  ;;  %v229_v21 = vld [vmem:[%s1164_s3] sm:$0xff]  ;;  %v230_v22 = vld [vmem:[%s1164_s3 + $0x8] sm:$0xff]  ;;  %v232_v25 = vld [vmem:[%s1164_s3 + $0x18] sm:$0xff] }
   0x9   :  { %v917_v23 = vpack.c.bf16 %v230_v22, %v229_v21  ;;  %v921_v26 = vpack.c.bf16 %v232_v25, %v231_v24  ;;  %v426_v43 = vld [vmem:[%s1165_s4] sm:$0x3]  ;;  %v768_v45 = vld [vmem:[%s1166_s7 + $0x8] sm:$0xff] }
   0xa   :  { %v767_v44 = vld [vmem:[%s1166_s7] sm:$0xff]  ;;  %v603_v13 = vld [vmem:[%s1167_s6 + $0x8] sm:$0xff] }
   0xb   :  { %828 = vmatpush3.bf16.msra.mxu0 %v951_v6  ;;  %75 = vperm.xlu0 %944, %v67_v15   ;;  %v601_v15 = vld [vmem:[%s1168_s5 + $0x8] sm:$0xff] }
   0xc   :  { %829 = vmatprep.subr.bf16.mxu0 %v952_v7  ;;  %918 = vmatprep.subr.bf16.mxu1 %v917_v23  ;;  %v602_v7 = vld [vmem:[%s1167_s6] sm:$0xff] }
   0xd   :  { %920 = vmatpush3.bf16.msra.mxu1 %v917_v23  ;;  %771 = vperm.xlu1 %945, %v767_v44  }
   0xe   :  { %922 = vmatprep.subr.bf16.mxu1 %v921_v26 }
   0xf   :  { %830 = vmatpush3.bf16.msra.mxu0 %v953_v8 }
  0x10   :  { %831 = vmatprep.subr.bf16.mxu0 %v954_v9 }
  0x11   :  { %924 = vmatpush3.bf16.msra.mxu1 %v921_v26  ;;  %776 = vperm.xlu1 %945, %v768_v45  }
  0x12   :  { %926 = vmatprep.subr.bf16.mxu1 %v917_v23 }
  0x13   :  { %832 = vmatpush3.bf16.msra.mxu0 %v955_v10 }
  0x14   :  { %833 = vmatprep.subr.bf16.mxu0 %v956_v11 }
  0x17   :  { %834 = vmatpush3.bf16.msra.mxu0 %v957_v14  ;;  %v600_v14 = vld [vmem:[%s1168_s5] sm:$0xff] }
  0x18   :  { %835 = vmatprep.subr.bf16.mxu0 %v958_v16 }
  0x1b   :  { %836 = vmatpush3.bf16.msra.mxu0 %v959_v17 }
  0x1c   :  { %837 = vmatprep.subr.bf16.mxu0 %v960_v18 }
  0x1f   :  { %838 = vmatpush3.bf16.msra.mxu0 %v961_v19 }
  0x22   :  { %217 = vmatmul.mubr.bf16.vlgmr.msra.gmra.mrb[0].mxu0 %v962_v20 }
  0x86   :  { %v71_v27 = vpop.permute.xlu0 %70 }
  0x8a   :  { %v76_v35 = vpop.permute.xlu0 %75 }
  0x8c   :  { %v772_v24 = vpop.permute.xlu1 %771 }
  0x90   :  { %v777_v25 = vpop.permute.xlu1 %776 }
  0xf5   :  { %v839_v28 = vpop.f32.mrb[0].mxu0 }
  0xf6   :  { %v840_v29 = vpop.f32.mrb[1].mxu0 }
  0xf7   :  { %v841_v30 = vadd.f32 %v840_v29, %v839_v28  ;;  %v842_v31 = vpop.f32.mrb[2].mxu0 }
  0xf8   :  { %v843_v32 = vpop.f32.mrb[3].mxu0 }
  0xf9   :  { %v219_v33 = vadd.f32 %v841_v30, %v71_v27  ;;  %v844_v34 = vadd.f32 %v843_v32, %v842_v31 }
  0xfb   :  { %v225_v36 = vmul.f32 0.2, %v219_v33  ;;  %v222_v37 = vadd.f32 %v844_v34, %v76_v35 }
  0xfd   :  { %v226_v38 = vmul.f32 0.2, %v222_v37  ;;  %v1096_v39 = vmax.f32 %v219_v33, %v225_v36 }
  0xff   :  { %v1098_v40 = vmax.f32 %v222_v37, %v226_v38  ;;  %879 = vmatprep.mubr.msk.f32.mxu1 %vm233_vm0, %v1096_v39  ;;  %v315_v41 = vmul.f32 %v1096_v39, %v1096_v39 }
 0x101   :  { %880 = vmatmul.mubr.msk.f32.vlgmr.msra.gmra.mrb[0].mxu1 %vm233_vm0, %v1098_v40  ;;  %v316_v42 = vmul.f32 %v1098_v40, %v1098_v40 }
 0x102   :  { %928 = vmatpush3.bf16.msra.mxu1 %v917_v23  ;;  %890 = vmatprep.mubr.msk.f32.mxu1 %vm233_vm0, %v315_v41 }
 0x103   :  { %930 = vmatprep.subr.bf16.mxu1 %v921_v26 }
 0x106   :  { %932 = vmatpush3.bf16.msra.mxu1 %v921_v26 }
 0x107   :  { %893 = vmatprep.subr.msk.mxu1 %vm434_vm1, %v426_v43 }
 0x109   :  { %891 = vmatmul.mubr.msk.f32.vlgmr.msra.gmra.mrb[2].mxu1 %vm233_vm0, %v316_v42 }
 0x10a   :  { %894 = vmatpush3.msk.msra.mxu1 %vm434_vm1, %v426_v43 }
 0x10b   :  { %898 = vmatprep.subr.msk.mxu1 %vm434_vm1, %v426_v43 }
 0x1d4   :  { %v881_v46 = vpop.f32.mrb[0].mxu1 }
 0x1d5   :  { %v399_v47 = vmul.f32 0.0625, %v881_v46  ;;  %v306_v48 = vpop.f32.mrb[1].mxu1 }
 0x1d6   :  { %v398_v49 = vmul.f32 0.0625, %v306_v48 }
 0x1d7   :  { %v403_v53 = vmul.f32 %v399_v47, %v399_v47 }
 0x1d8   :  { %895 = vmatprep.mubr.msk.f32.mxu1 %vm427_vm2, %v398_v49  ;;  %v937_v50 = vpack.c.bf16 %v399_v47, %v398_v49  ;;  %v402_v56 = vmul.f32 %v398_v49, %v398_v49 }
 0x1d9   :  { %896 = vmatmul.mubr.msk.f32.vlgmr.msra.gmra.mrb[4].mxu1 %vm427_vm2, %v399_v47 }
 0x1da   :  { %899 = vmatpush3.msk.msra.mxu1 %vm434_vm1, %v426_v43 }
 0x1dc   :  { %v892_v51 = vpop.f32.mrb[2].mxu1 }
 0x1dd   :  { %v401_v52 = vmul.f32 0.0625, %v892_v51  ;;  %v389_v54 = vpop.f32.mrb[3].mxu1 }
 0x1de   :  { %v400_v55 = vmul.f32 0.0625, %v389_v54 }
 0x1df   :  { %v405_v57 = vsub.f32 %v401_v52, %v403_v53 }
 0x1e0   :  { %v404_v58 = vsub.f32 %v400_v55, %v402_v56 }
 0x1e1   :  { %v407_v59 = vmax.f32 %v405_v57, 0.0 }
 0x1e2   :  { %v406_v60 = vmax.f32 %v404_v58, 0.0 }
 0x1e3   :  { %v423_v61 = vadd.f32 1e-05, %v407_v59  ;;  %965 = vrsqrt.f32 %v407_v59  ;;  %vm417_vm3 = vcmp.eq.f32.partialorder %v407_v59, inf  ;;  %v420_v3 = vand.u32 2147483648, %v407_v59 }
 0x1e4   :  { %v422_v62 = vadd.f32 1e-05, %v406_v60  ;;  %967 = vrsqrt.f32 %v406_v60  ;;  %vm410_vm5 = vcmp.eq.f32.partialorder %v406_v60, inf  ;;  %v413_v5 = vand.u32 2147483648, %v406_v60 }
 0x1e5   :  { %vm419_vm6 = vcmp.eq.f32.partialorder %v407_v59, 0.0  ;;  %vm412_vm7 = vcmp.eq.f32.partialorder %v406_v60, 0.0 }
 0x1e6   :  { %969 = vrsqrt.f32 %v422_v62 }
 0x1e7   :  { %971 = vrsqrt.f32 %v423_v61 }
 0x1ed   :  { %v966_v63 = vpop.eup %965 }
 0x1ee   :  { %v968_v0 = vpop.eup %967  ;;  %v416_v1 = vmul.f32 %v966_v63, %v407_v59 }
 0x1ef   :  { %v409_v2 = vmul.f32 %v968_v0, %v406_v60 }
 0x1f0   :  { %v970_v4 = vpop.eup %969  ;;  %v418_v6 = vsel %vm417_vm3, %v407_v59, %v416_v1 }
 0x1f1   :  { %v972_v8 = vpop.eup %971  ;;  %900 = vmatprep.mubr.msk.f32.mxu1 %vm427_vm2, %v970_v4  ;;  %v411_v9 = vsel %vm410_vm5, %v406_v60, %v409_v2  ;;  %v421_v10 = vsel %vm419_vm6, %v420_v3, %v418_v6 }
 0x1f2   :  { %901 = vmatmul.mubr.msk.f32.vlgmr.msra.gmra.mrb[6].mxu1 %vm427_vm2, %v972_v8  ;;  %v414_v11 = vsel %vm412_vm7, %v413_v5, %v411_v9 }
 0x1f3   :  { %v933_v12 = vpack.c.bf16 %v421_v10, %v414_v11  ;;  %907 = vmatprep.mubr.msk.f32.mxu1 %vm604_vm4, %v602_v7 }
 0x1f5   :  { %934 = vmatprep.subr.bf16.mxu1 %v933_v12 }
 0x1f6   :  { %936 = vmatpush3.bf16.msra.mxu1 %v933_v12 }
 0x1f7   :  { %938 = vmatprep.subr.bf16.mxu1 %v937_v50 }
 0x1f9   :  { %908 = vmatmul.mubr.msk.f32.vlgmr.msra.gmra.mrb[8].mxu1 %vm604_vm4, %v603_v13 }
 0x1fa   :  { %940 = vmatpush3.bf16.msra.mxu1 %v937_v50  ;;  %914 = vmatprep.mubr.msk.f32.mxu1 %vm604_vm4, %v600_v14 }
 0x201   :  { %915 = vmatmul.mubr.msk.f32.vlgmr.msra.gmra.mrb[8].mxu1 %vm604_vm4, %v601_v15 }
 0x2ac   :  { %v897_v16 = vpop.f32.mrb[4].mxu1 }
 0x2ad   :  { %v504_v17 = vpop.f32.mrb[5].mxu1  ;;  %v595_v18 = vsub.f32 %v1098_v40, %v897_v16 }
 0x2ae   :  { %v594_v19 = vsub.f32 %v1096_v39, %v504_v17 }
 0x2c5   :  { %v902_v20 = vpop.f32.mrb[6].mxu1 }
 0x2c6   :  { %v597_v21 = vmul.f32 %v902_v20, %v595_v18  ;;  %v585_v22 = vpop.f32.mrb[7].mxu1 }
 0x2c7   :  { %v596_v23 = vmul.f32 %v594_v19, %v585_v22 }
 0x2c8   :  { %599 = vst.msk [vmem:[%s1169_s8 + $0x8] sm:$0xff] %vm233_vm0, %v597_v21 }
 0x2c9   :  { %598 = vst.msk [vmem:[%s1169_s8] sm:$0xff] %vm233_vm0, %v596_v23 }
 0x2d4   :  { %v916_v26 = vpop.f32.mrb[8].mxu1 }
 0x2d5   :  { %v780_v27 = vadd.f32 %v916_v26, %v777_v25  ;;  %v758_v28 = vpop.f32.mrb[9].mxu1 }
 0x2d6   :  { %v779_v29 = vadd.f32 %v772_v24, %v758_v28 }
 0x2d7   :  { %782 = vst.msk [vmem:[%s1170_s9 + $0x8] sm:$0xff] %vm427_vm2, %v780_v27 }
 0x2d8   :  { %781 = vst.msk [vmem:[%s1170_s9] sm:$0xff] %vm427_vm2, %v779_v29 }

</bundles_post_ra>
